<compile_context>
chip_gen: v7x
topology: tpu7x:2x2x1
jax: 0.10.0
libtpu: 0.0.40
codegen_flags: <defaults>
</compile_context>

<pallas_src>
import functools

import jax
import jax.numpy as jnp
from jax import lax
from jax.experimental import pallas as pl
from jax.experimental.pallas import tpu as pltpu


def _round_up(x, m):
    return (x + m - 1) // m * m


def _pick_tile(padded_dim, want):
    """Largest multiple of 128 that divides padded_dim and is <= want."""
    t = min(want, padded_dim)
    while padded_dim % t:
        t -= 128
    return t


def _aspp_kernel(x_ref, w_ref, scale_ref, shift_ref, o_ref, acc_ref, *, taps, rows):
    # x_ref:     (1, rows_total, Cin_tile)   flattened padded image (bf16/f32)
    # w_ref:     (KH*KW, Cin_tile, Cout_tile)
    # scale_ref: (1, Cout_tile)  folded BN scale (f32)
    # shift_ref: (1, Cout_tile)  folded BN shift (f32)
    # o_ref:     (1, rows, Cout_tile)
    # acc_ref:   (rows, Cout_tile) f32 VMEM scratch (persists across grid steps)
    ci = pl.program_id(2)

    @pl.when(ci == 0)
    def _init():
        acc_ref[...] = jnp.zeros_like(acc_ref)

    # Dilated conv: one contiguous-row-window matmul per kernel tap.
    for tap, off in taps:  # static python ints -> static slices
        lhs = x_ref[0, pl.ds(off, rows), :]                 # (rows, Cin_tile)
        acc_ref[...] += jnp.dot(lhs, w_ref[tap],
                                preferred_element_type=jnp.float32)

    # Fused eval-mode BatchNorm + ReLU, written straight from the accumulator.
    @pl.when(ci == pl.num_programs(2) - 1)
    def _finalize():
        y = acc_ref[...] * scale_ref[...] + shift_ref[...]
        o_ref[0] = jnp.maximum(y, 0.0).astype(o_ref.dtype)


def aspp_module_forward(x_nchw, weight_oihw, gamma, beta,
                        running_mean, running_var,
                        *, padding, dilation, eps=1e-5,
                        compute_dtype=jnp.bfloat16,
                        cin_tile=256, cout_tile=256):
    """Pallas implementation of _ASPPModule.forward (eval-mode BN)."""
    N, Cin, H, W = x_nchw.shape
    Cout, _, KH, KW = weight_oihw.shape

    H_out = H + 2 * padding - (KH - 1) * dilation
    W_out = W + 2 * padding - (KW - 1) * dilation
    Hp, Wp = H + 2 * padding, W + 2 * padding

    # --- channel padding to lane width (128) ------------------------------
    Cin_p = _round_up(Cin, 128)
    Cout_p = _round_up(Cout, 128)
    tci = _pick_tile(Cin_p, cin_tile)
    tco = _pick_tile(Cout_p, cout_tile)

    # --- activations: NCHW -> NHWC, spatial+channel pad, flatten rows ------
    x_nhwc = jnp.transpose(x_nchw, (0, 2, 3, 1)).astype(compute_dtype)
    x_pad = jnp.pad(x_nhwc, ((0, 0), (padding, padding),
                             (padding, padding), (0, Cin_p - Cin)))
    x_flat = x_pad.reshape(N, Hp * Wp, Cin_p)
    extra = (KW - 1) * dilation           # slack so the last tap window stays in-bounds
    if extra:
        x_flat = jnp.pad(x_flat, ((0, 0), (0, extra), (0, 0)))
    rows_total = Hp * Wp + extra

    # --- weights: OIHW -> (KH*KW, Cin_p, Cout_p), cast once ----------------
    w_hwio = jnp.transpose(weight_oihw, (2, 3, 1, 0)).astype(compute_dtype)
    w_hwio = jnp.pad(w_hwio, ((0, 0), (0, 0), (0, Cin_p - Cin), (0, Cout_p - Cout)))
    w_k = w_hwio.reshape(KH * KW, Cin_p, Cout_p)

    # --- fold BatchNorm (eval mode) into scale/shift ------------------------
    inv_std = 1.0 / jnp.sqrt(running_var.astype(jnp.float32) + eps)
    scale = gamma.astype(jnp.float32) * inv_std
    shift = beta.astype(jnp.float32) - running_mean.astype(jnp.float32) * scale
    scale = jnp.pad(scale, (0, Cout_p - Cout)).reshape(1, Cout_p)
    shift = jnp.pad(shift, (0, Cout_p - Cout)).reshape(1, Cout_p)

    # Flattened output rows: row h*Wp + w holds output (h, w); columns
    # w in [W_out, Wp) are junk and get sliced off below.
    R = H_out * Wp
    taps = tuple((kh * KW + kw, kh * dilation * Wp + kw * dilation)
                 for kh in range(KH) for kw in range(KW))

    kernel = functools.partial(_aspp_kernel, taps=taps, rows=R)

    out_flat = pl.pallas_call(
        kernel,
        out_shape=jax.ShapeDtypeStruct((N, R, Cout_p), x_nchw.dtype),
        grid_spec=pltpu.PrefetchScalarGridSpec(
            num_scalar_prefetch=0,
            grid=(N, Cout_p // tco, Cin_p // tci),
            in_specs=[
                pl.BlockSpec((1, rows_total, tci), lambda n, co, ci: (n, 0, ci)),
                pl.BlockSpec((KH * KW, tci, tco), lambda n, co, ci: (0, ci, co)),
                pl.BlockSpec((1, tco), lambda n, co, ci: (0, co)),
                pl.BlockSpec((1, tco), lambda n, co, ci: (0, co)),
            ],
            out_specs=pl.BlockSpec((1, R, tco), lambda n, co, ci: (n, 0, co)),
            scratch_shapes=[pltpu.VMEM((R, tco), jnp.float32)],
        ),
        compiler_params=pltpu.CompilerParams(
            dimension_semantics=("parallel", "parallel", "arbitrary"),
            vmem_limit_bytes=64 * 1024 * 1024,
        ),
    )(x_flat, w_k, scale, shift)

    # (N, H_out*Wp, Cout_p) -> (N, H_out, Wp, Cout_p) -> drop junk cols/chans.
    out = out_flat.reshape(N, H_out, Wp, Cout_p)[:, :, :W_out, :Cout]
    return jnp.transpose(out, (0, 3, 1, 2))  # NHWC -> NCHW


def _reference_forward(x_nchw, weight_oihw, gamma, beta,
                       running_mean, running_var,
                       *, padding, dilation, eps=1e-5,
                       compute_dtype=jnp.bfloat16):
    """Pure-JAX reference (lax.conv).  Applies the same bf16 input quantization
    as the kernel so the comparison isolates the kernel's conv+BN+ReLU math."""
    xq = x_nchw.astype(compute_dtype).astype(jnp.float32)
    wq = weight_oihw.astype(compute_dtype).astype(jnp.float32)
    x_nhwc = jnp.transpose(xq, (0, 2, 3, 1))
    w_hwio = jnp.transpose(wq, (2, 3, 1, 0))
    y = lax.conv_general_dilated(
        x_nhwc, w_hwio,
        window_strides=(1, 1),
        padding=((padding, padding), (padding, padding)),
        rhs_dilation=(dilation, dilation),
        dimension_numbers=("NHWC", "HWIO", "NHWC"),
        precision=lax.Precision.HIGHEST,
    )
    inv_std = 1.0 / jnp.sqrt(running_var + eps)
    y = (y - running_mean) * inv_std * gamma + beta
    y = jnp.maximum(y, 0.0)
    return jnp.transpose(y, (0, 3, 1, 2))


if __name__ == "__main__":
    # Small shapes consistent with an ASPP branch: 3x3 atrous conv, dilation=2.
    N, Cin, H, W = 2, 8, 16, 16
    Cout, K = 16, 3
    padding, dilation = 2, 2

    key = jax.random.PRNGKey(0)
    kx, kw = jax.random.split(key)

    x = jax.random.normal(kx, (N, Cin, H, W), dtype=jnp.float32)

    # kaiming_normal_ on Conv2d weight: std = sqrt(2 / fan_in), fan_in = Cin*K*K
    fan_in = Cin * K * K
    weight = jax.random.normal(kw, (Cout, Cin, K, K), dtype=jnp.float32) * jnp.sqrt(
        2.0 / fan_in
    )

    # BatchNorm2d params as set by _init_weight / default buffers.
    gamma = jnp.ones((Cout,), jnp.float32)
    beta = jnp.zeros((Cout,), jnp.float32)
    running_mean = jnp.zeros((Cout,), jnp.float32)
    running_var = jnp.ones((Cout,), jnp.float32)

    out = aspp_module_forward(
        x, weight, gamma, beta, running_mean, running_var,
        padding=padding, dilation=dilation,
    )
    out = jax.block_until_ready(out)

    ref = _reference_forward(
        x, weight, gamma, beta, running_mean, running_var,
        padding=padding, dilation=dilation,
    )
    ref = jax.block_until_ready(ref)

    assert out.shape == (N, Cout, H, W), out.shape
    assert jnp.allclose(out, ref, atol=1e-3, rtol=1e-3), float(
        jnp.max(jnp.abs(out - ref))
    )
    print("KERNEL_OK")
</pallas_src>

<mosaic_0001>
module attributes {stable_mosaic.version = 11 : i64} {
  func.func @_aspp_kernel(%arg0: i32, %arg1: i32, %arg2: i32, %arg3: memref<1x404x128xbf16, #tpu.memory_space<vmem>>, %arg4: memref<9x128x128xbf16, #tpu.memory_space<vmem>>, %arg5: memref<1x128xf32, #tpu.memory_space<vmem>>, %arg6: memref<1x128xf32, #tpu.memory_space<vmem>>, %arg7: memref<1x320x128xf32, #tpu.memory_space<vmem>>, %arg8: memref<320x128xf32, #tpu.memory_space<vmem>>) attributes {dimension_semantics = [#tpu.dimension_semantics<parallel>, #tpu.dimension_semantics<parallel>, #tpu.dimension_semantics<arbitrary>], iteration_bounds = array<i64: 2, 1, 1>, scalar_prefetch = 0 : i64, scratch_operands = 1 : i64, tpu.core_type = #tpu.core_type<tc>, window_params = [{transform_indices = @transform_0, window_bounds = array<i64: 1, 404, 128>}, {transform_indices = @transform_1, window_bounds = array<i64: 9, 128, 128>}, {transform_indices = @transform_2, window_bounds = array<i64: 1, 128>}, {transform_indices = @transform_3, window_bounds = array<i64: 1, 128>}, {transform_indices = @transform_4, window_bounds = array<i64: 1, 320, 128>}]} {
    %c0_i32 = arith.constant 0 : i32
    %0 = arith.cmpi eq, %arg2, %c0_i32 : i32
    %1 = arith.extui %0 : i1 to i32
    %c0_i32_0 = arith.constant 0 : i32
    %2 = arith.cmpi ne, %1, %c0_i32_0 : i32
    scf.if %2 {
      %cst_86 = arith.constant 0.000000e+00 : f32
      %78 = vector.broadcast %cst_86 : f32 to vector<320x128xf32>
      %c0_87 = arith.constant 0 : index
      %c0_88 = arith.constant 0 : index
      %79 = vector.load %arg8[%c0_87, %c0_88] : memref<320x128xf32, #tpu.memory_space<vmem>>, vector<320x128xf32>
      tpu.vector_store %arg8[%c0_87, %c0_88], %78 {strides = array<i32>} : memref<320x128xf32, #tpu.memory_space<vmem>>, vector<320x128xf32>,
    } else {
    }
    %c0 = arith.constant 0 : index
    %c0_1 = arith.constant 0 : index
    %c0_2 = arith.constant 0 : index
    %3 = vector.load %arg3[%c0, %c0_1, %c0_2] : memref<1x404x128xbf16, #tpu.memory_space<vmem>>, vector<1x320x128xbf16>
    %4 = vector.shape_cast %3 : vector<1x320x128xbf16> to vector<320x128xbf16>
    %c0_3 = arith.constant 0 : index
    %c0_4 = arith.constant 0 : index
    %5 = vector.load %arg8[%c0_3, %c0_4] : memref<320x128xf32, #tpu.memory_space<vmem>>, vector<320x128xf32>
    %c0_5 = arith.constant 0 : index
    %c0_6 = arith.constant 0 : index
    %c0_7 = arith.constant 0 : index
    %6 = vector.load %arg4[%c0_5, %c0_6, %c0_7] : memref<9x128x128xbf16, #tpu.memory_space<vmem>>, vector<1x128x128xbf16>
    %7 = vector.shape_cast %6 : vector<1x128x128xbf16> to vector<128x128xbf16>
    %cst = arith.constant dense<0.000000e+00> : vector<320x128xf32>
    %8 = tpu.matmul %4, %7, %cst {dimension_numbers = #tpu.dot_dimension_numbers<[1], [0], [0], [1], [0, 0, 1, 1], [], []>} : vector<320x128xbf16>, vector<128x128xbf16>, vector<320x128xf32> -> vector<320x128xf32>
    %9 = arith.addf %5, %8 : vector<320x128xf32>
    %c0_8 = arith.constant 0 : index
    %c0_9 = arith.constant 0 : index
    %10 = vector.load %arg8[%c0_8, %c0_9] : memref<320x128xf32, #tpu.memory_space<vmem>>, vector<320x128xf32>
    tpu.vector_store %arg8[%c0_8, %c0_9], %9 {strides = array<i32>} : memref<320x128xf32, #tpu.memory_space<vmem>>, vector<320x128xf32>,
    %c0_10 = arith.constant 0 : index
    %c2 = arith.constant 2 : index
    %c0_11 = arith.constant 0 : index
    %11 = vector.load %arg3[%c0_10, %c2, %c0_11] : memref<1x404x128xbf16, #tpu.memory_space<vmem>>, vector<1x320x128xbf16>
    %12 = vector.shape_cast %11 : vector<1x320x128xbf16> to vector<320x128xbf16>
    %c0_12 = arith.constant 0 : index
    %c0_13 = arith.constant 0 : index
    %13 = vector.load %arg8[%c0_12, %c0_13] : memref<320x128xf32, #tpu.memory_space<vmem>>, vector<320x128xf32>
    %c1 = arith.constant 1 : index
    %c0_14 = arith.constant 0 : index
    %c0_15 = arith.constant 0 : index
    %14 = vector.load %arg4[%c1, %c0_14, %c0_15] : memref<9x128x128xbf16, #tpu.memory_space<vmem>>, vector<1x128x128xbf16>
    %15 = vector.shape_cast %14 : vector<1x128x128xbf16> to vector<128x128xbf16>
    %cst_16 = arith.constant dense<0.000000e+00> : vector<320x128xf32>
    %16 = tpu.matmul %12, %15, %cst_16 {dimension_numbers = #tpu.dot_dimension_numbers<[1], [0], [0], [1], [0, 0, 1, 1], [], []>} : vector<320x128xbf16>, vector<128x128xbf16>, vector<320x128xf32> -> vector<320x128xf32>
    %17 = arith.addf %13, %16 : vector<320x128xf32>
    %c0_17 = arith.constant 0 : index
    %c0_18 = arith.constant 0 : index
    %18 = vector.load %arg8[%c0_17, %c0_18] : memref<320x128xf32, #tpu.memory_space<vmem>>, vector<320x128xf32>
    tpu.vector_store %arg8[%c0_17, %c0_18], %17 {strides = array<i32>} : memref<320x128xf32, #tpu.memory_space<vmem>>, vector<320x128xf32>,
    %c0_19 = arith.constant 0 : index
    %c4 = arith.constant 4 : index
    %c0_20 = arith.constant 0 : index
    %19 = vector.load %arg3[%c0_19, %c4, %c0_20] : memref<1x404x128xbf16, #tpu.memory_space<vmem>>, vector<1x320x128xbf16>
    %20 = vector.shape_cast %19 : vector<1x320x128xbf16> to vector<320x128xbf16>
    %c0_21 = arith.constant 0 : index
    %c0_22 = arith.constant 0 : index
    %21 = vector.load %arg8[%c0_21, %c0_22] : memref<320x128xf32, #tpu.memory_space<vmem>>, vector<320x128xf32>
    %c2_23 = arith.constant 2 : index
    %c0_24 = arith.constant 0 : index
    %c0_25 = arith.constant 0 : index
    %22 = vector.load %arg4[%c2_23, %c0_24, %c0_25] : memref<9x128x128xbf16, #tpu.memory_space<vmem>>, vector<1x128x128xbf16>
    %23 = vector.shape_cast %22 : vector<1x128x128xbf16> to vector<128x128xbf16>
    %cst_26 = arith.constant dense<0.000000e+00> : vector<320x128xf32>
    %24 = tpu.matmul %20, %23, %cst_26 {dimension_numbers = #tpu.dot_dimension_numbers<[1], [0], [0], [1], [0, 0, 1, 1], [], []>} : vector<320x128xbf16>, vector<128x128xbf16>, vector<320x128xf32> -> vector<320x128xf32>
    %25 = arith.addf %21, %24 : vector<320x128xf32>
    %c0_27 = arith.constant 0 : index
    %c0_28 = arith.constant 0 : index
    %26 = vector.load %arg8[%c0_27, %c0_28] : memref<320x128xf32, #tpu.memory_space<vmem>>, vector<320x128xf32>
    tpu.vector_store %arg8[%c0_27, %c0_28], %25 {strides = array<i32>} : memref<320x128xf32, #tpu.memory_space<vmem>>, vector<320x128xf32>,
    %c0_29 = arith.constant 0 : index
    %c40 = arith.constant 40 : index
    %c0_30 = arith.constant 0 : index
    %27 = vector.load %arg3[%c0_29, %c40, %c0_30] : memref<1x404x128xbf16, #tpu.memory_space<vmem>>, vector<1x320x128xbf16>
    %28 = vector.shape_cast %27 : vector<1x320x128xbf16> to vector<320x128xbf16>
    %c0_31 = arith.constant 0 : index
    %c0_32 = arith.constant 0 : index
    %29 = vector.load %arg8[%c0_31, %c0_32] : memref<320x128xf32, #tpu.memory_space<vmem>>, vector<320x128xf32>
    %c3 = arith.constant 3 : index
    %c0_33 = arith.constant 0 : index
    %c0_34 = arith.constant 0 : index
    %30 = vector.load %arg4[%c3, %c0_33, %c0_34] : memref<9x128x128xbf16, #tpu.memory_space<vmem>>, vector<1x128x128xbf16>
    %31 = vector.shape_cast %30 : vector<1x128x128xbf16> to vector<128x128xbf16>
    %cst_35 = arith.constant dense<0.000000e+00> : vector<320x128xf32>
    %32 = tpu.matmul %28, %31, %cst_35 {dimension_numbers = #tpu.dot_dimension_numbers<[1], [0], [0], [1], [0, 0, 1, 1], [], []>} : vector<320x128xbf16>, vector<128x128xbf16>, vector<320x128xf32> -> vector<320x128xf32>
    %33 = arith.addf %29, %32 : vector<320x128xf32>
    %c0_36 = arith.constant 0 : index
    %c0_37 = arith.constant 0 : index
    %34 = vector.load %arg8[%c0_36, %c0_37] : memref<320x128xf32, #tpu.memory_space<vmem>>, vector<320x128xf32>
    tpu.vector_store %arg8[%c0_36, %c0_37], %33 {strides = array<i32>} : memref<320x128xf32, #tpu.memory_space<vmem>>, vector<320x128xf32>,
    %c0_38 = arith.constant 0 : index
    %c42 = arith.constant 42 : index
    %c0_39 = arith.constant 0 : index
    %35 = vector.load %arg3[%c0_38, %c42, %c0_39] : memref<1x404x128xbf16, #tpu.memory_space<vmem>>, vector<1x320x128xbf16>
    %36 = vector.shape_cast %35 : vector<1x320x128xbf16> to vector<320x128xbf16>
    %c0_40 = arith.constant 0 : index
    %c0_41 = arith.constant 0 : index
    %37 = vector.load %arg8[%c0_40, %c0_41] : memref<320x128xf32, #tpu.memory_space<vmem>>, vector<320x128xf32>
    %c4_42 = arith.constant 4 : index
    %c0_43 = arith.constant 0 : index
    %c0_44 = arith.constant 0 : index
    %38 = vector.load %arg4[%c4_42, %c0_43, %c0_44] : memref<9x128x128xbf16, #tpu.memory_space<vmem>>, vector<1x128x128xbf16>
    %39 = vector.shape_cast %38 : vector<1x128x128xbf16> to vector<128x128xbf16>
    %cst_45 = arith.constant dense<0.000000e+00> : vector<320x128xf32>
    %40 = tpu.matmul %36, %39, %cst_45 {dimension_numbers = #tpu.dot_dimension_numbers<[1], [0], [0], [1], [0, 0, 1, 1], [], []>} : vector<320x128xbf16>, vector<128x128xbf16>, vector<320x128xf32> -> vector<320x128xf32>
    %41 = arith.addf %37, %40 : vector<320x128xf32>
    %c0_46 = arith.constant 0 : index
    %c0_47 = arith.constant 0 : index
    %42 = vector.load %arg8[%c0_46, %c0_47] : memref<320x128xf32, #tpu.memory_space<vmem>>, vector<320x128xf32>
    tpu.vector_store %arg8[%c0_46, %c0_47], %41 {strides = array<i32>} : memref<320x128xf32, #tpu.memory_space<vmem>>, vector<320x128xf32>,
    %c0_48 = arith.constant 0 : index
    %c44 = arith.constant 44 : index
    %c0_49 = arith.constant 0 : index
    %43 = vector.load %arg3[%c0_48, %c44, %c0_49] : memref<1x404x128xbf16, #tpu.memory_space<vmem>>, vector<1x320x128xbf16>
    %44 = vector.shape_cast %43 : vector<1x320x128xbf16> to vector<320x128xbf16>
    %c0_50 = arith.constant 0 : index
    %c0_51 = arith.constant 0 : index
    %45 = vector.load %arg8[%c0_50, %c0_51] : memref<320x128xf32, #tpu.memory_space<vmem>>, vector<320x128xf32>
    %c5 = arith.constant 5 : index
    %c0_52 = arith.constant 0 : index
    %c0_53 = arith.constant 0 : index
    %46 = vector.load %arg4[%c5, %c0_52, %c0_53] : memref<9x128x128xbf16, #tpu.memory_space<vmem>>, vector<1x128x128xbf16>
    %47 = vector.shape_cast %46 : vector<1x128x128xbf16> to vector<128x128xbf16>
    %cst_54 = arith.constant dense<0.000000e+00> : vector<320x128xf32>
    %48 = tpu.matmul %44, %47, %cst_54 {dimension_numbers = #tpu.dot_dimension_numbers<[1], [0], [0], [1], [0, 0, 1, 1], [], []>} : vector<320x128xbf16>, vector<128x128xbf16>, vector<320x128xf32> -> vector<320x128xf32>
    %49 = arith.addf %45, %48 : vector<320x128xf32>
    %c0_55 = arith.constant 0 : index
    %c0_56 = arith.constant 0 : index
    %50 = vector.load %arg8[%c0_55, %c0_56] : memref<320x128xf32, #tpu.memory_space<vmem>>, vector<320x128xf32>
    tpu.vector_store %arg8[%c0_55, %c0_56], %49 {strides = array<i32>} : memref<320x128xf32, #tpu.memory_space<vmem>>, vector<320x128xf32>,
    %c0_57 = arith.constant 0 : index
    %c80 = arith.constant 80 : index
    %c0_58 = arith.constant 0 : index
    %51 = vector.load %arg3[%c0_57, %c80, %c0_58] : memref<1x404x128xbf16, #tpu.memory_space<vmem>>, vector<1x320x128xbf16>
    %52 = vector.shape_cast %51 : vector<1x320x128xbf16> to vector<320x128xbf16>
    %c0_59 = arith.constant 0 : index
    %c0_60 = arith.constant 0 : index
    %53 = vector.load %arg8[%c0_59, %c0_60] : memref<320x128xf32, #tpu.memory_space<vmem>>, vector<320x128xf32>
    %c6 = arith.constant 6 : index
    %c0_61 = arith.constant 0 : index
    %c0_62 = arith.constant 0 : index
    %54 = vector.load %arg4[%c6, %c0_61, %c0_62] : memref<9x128x128xbf16, #tpu.memory_space<vmem>>, vector<1x128x128xbf16>
    %55 = vector.shape_cast %54 : vector<1x128x128xbf16> to vector<128x128xbf16>
    %cst_63 = arith.constant dense<0.000000e+00> : vector<320x128xf32>
    %56 = tpu.matmul %52, %55, %cst_63 {dimension_numbers = #tpu.dot_dimension_numbers<[1], [0], [0], [1], [0, 0, 1, 1], [], []>} : vector<320x128xbf16>, vector<128x128xbf16>, vector<320x128xf32> -> vector<320x128xf32>
    %57 = arith.addf %53, %56 : vector<320x128xf32>
    %c0_64 = arith.constant 0 : index
    %c0_65 = arith.constant 0 : index
    %58 = vector.load %arg8[%c0_64, %c0_65] : memref<320x128xf32, #tpu.memory_space<vmem>>, vector<320x128xf32>
    tpu.vector_store %arg8[%c0_64, %c0_65], %57 {strides = array<i32>} : memref<320x128xf32, #tpu.memory_space<vmem>>, vector<320x128xf32>,
    %c0_66 = arith.constant 0 : index
    %c82 = arith.constant 82 : index
    %c0_67 = arith.constant 0 : index
    %59 = vector.load %arg3[%c0_66, %c82, %c0_67] : memref<1x404x128xbf16, #tpu.memory_space<vmem>>, vector<1x320x128xbf16>
    %60 = vector.shape_cast %59 : vector<1x320x128xbf16> to vector<320x128xbf16>
    %c0_68 = arith.constant 0 : index
    %c0_69 = arith.constant 0 : index
    %61 = vector.load %arg8[%c0_68, %c0_69] : memref<320x128xf32, #tpu.memory_space<vmem>>, vector<320x128xf32>
    %c7 = arith.constant 7 : index
    %c0_70 = arith.constant 0 : index
    %c0_71 = arith.constant 0 : index
    %62 = vector.load %arg4[%c7, %c0_70, %c0_71] : memref<9x128x128xbf16, #tpu.memory_space<vmem>>, vector<1x128x128xbf16>
    %63 = vector.shape_cast %62 : vector<1x128x128xbf16> to vector<128x128xbf16>
    %cst_72 = arith.constant dense<0.000000e+00> : vector<320x128xf32>
    %64 = tpu.matmul %60, %63, %cst_72 {dimension_numbers = #tpu.dot_dimension_numbers<[1], [0], [0], [1], [0, 0, 1, 1], [], []>} : vector<320x128xbf16>, vector<128x128xbf16>, vector<320x128xf32> -> vector<320x128xf32>
    %65 = arith.addf %61, %64 : vector<320x128xf32>
    %c0_73 = arith.constant 0 : index
    %c0_74 = arith.constant 0 : index
    %66 = vector.load %arg8[%c0_73, %c0_74] : memref<320x128xf32, #tpu.memory_space<vmem>>, vector<320x128xf32>
    tpu.vector_store %arg8[%c0_73, %c0_74], %65 {strides = array<i32>} : memref<320x128xf32, #tpu.memory_space<vmem>>, vector<320x128xf32>,
    %c0_75 = arith.constant 0 : index
    %c84 = arith.constant 84 : index
    %c0_76 = arith.constant 0 : index
    %67 = vector.load %arg3[%c0_75, %c84, %c0_76] : memref<1x404x128xbf16, #tpu.memory_space<vmem>>, vector<1x320x128xbf16>
    %68 = vector.shape_cast %67 : vector<1x320x128xbf16> to vector<320x128xbf16>
    %c0_77 = arith.constant 0 : index
    %c0_78 = arith.constant 0 : index
    %69 = vector.load %arg8[%c0_77, %c0_78] : memref<320x128xf32, #tpu.memory_space<vmem>>, vector<320x128xf32>
    %c8 = arith.constant 8 : index
    %c0_79 = arith.constant 0 : index
    %c0_80 = arith.constant 0 : index
    %70 = vector.load %arg4[%c8, %c0_79, %c0_80] : memref<9x128x128xbf16, #tpu.memory_space<vmem>>, vector<1x128x128xbf16>
    %71 = vector.shape_cast %70 : vector<1x128x128xbf16> to vector<128x128xbf16>
    %cst_81 = arith.constant dense<0.000000e+00> : vector<320x128xf32>
    %72 = tpu.matmul %68, %71, %cst_81 {dimension_numbers = #tpu.dot_dimension_numbers<[1], [0], [0], [1], [0, 0, 1, 1], [], []>} : vector<320x128xbf16>, vector<128x128xbf16>, vector<320x128xf32> -> vector<320x128xf32>
    %73 = arith.addf %69, %72 : vector<320x128xf32>
    %c0_82 = arith.constant 0 : index
    %c0_83 = arith.constant 0 : index
    %74 = vector.load %arg8[%c0_82, %c0_83] : memref<320x128xf32, #tpu.memory_space<vmem>>, vector<320x128xf32>
    tpu.vector_store %arg8[%c0_82, %c0_83], %73 {strides = array<i32>} : memref<320x128xf32, #tpu.memory_space<vmem>>, vector<320x128xf32>,
    %c0_i32_84 = arith.constant 0 : i32
    %75 = arith.cmpi eq, %arg2, %c0_i32_84 : i32
    %76 = arith.extui %75 : i1 to i32
    %c0_i32_85 = arith.constant 0 : i32
    %77 = arith.cmpi ne, %76, %c0_i32_85 : i32
    scf.if %77 {
      %c0_86 = arith.constant 0 : index
      %c0_87 = arith.constant 0 : index
      %78 = vector.load %arg8[%c0_86, %c0_87] : memref<320x128xf32, #tpu.memory_space<vmem>>, vector<320x128xf32>
      %c0_88 = arith.constant 0 : index
      %c0_89 = arith.constant 0 : index
      %79 = vector.load %arg5[%c0_88, %c0_89] : memref<1x128xf32, #tpu.memory_space<vmem>>, vector<1x128xf32>
      %80 = vector.broadcast %79 : vector<1x128xf32> to vector<320x128xf32>
      %81 = arith.mulf %78, %80 : vector<320x128xf32>
      %c0_90 = arith.constant 0 : index
      %c0_91 = arith.constant 0 : index
      %82 = vector.load %arg6[%c0_90, %c0_91] : memref<1x128xf32, #tpu.memory_space<vmem>>, vector<1x128xf32>
      %83 = vector.broadcast %82 : vector<1x128xf32> to vector<320x128xf32>
      %84 = arith.addf %81, %83 : vector<320x128xf32>
      %cst_92 = arith.constant 0.000000e+00 : f32
      %85 = vector.broadcast %cst_92 : f32 to vector<320x128xf32>
      %86 = arith.maximumf %84, %85 : vector<320x128xf32>
      %c0_93 = arith.constant 0 : index
      %c0_94 = arith.constant 0 : index
      %c0_95 = arith.constant 0 : index
      %87 = vector.load %arg7[%c0_93, %c0_94, %c0_95] : memref<1x320x128xf32, #tpu.memory_space<vmem>>, vector<1x320x128xf32>
      %88 = vector.shape_cast %87 : vector<1x320x128xf32> to vector<320x128xf32>
      %89 = vector.shape_cast %86 : vector<320x128xf32> to vector<1x320x128xf32>
      tpu.vector_store %arg7[%c0_93, %c0_94, %c0_95], %89 {strides = array<i32>} : memref<1x320x128xf32, #tpu.memory_space<vmem>>, vector<1x320x128xf32>,
    } else {
    }
    return
  }
  func.func @transform_0(%arg0: i32, %arg1: i32, %arg2: i32) -> (i32, i32, i32) {
    %c0_i32 = arith.constant 0 : i32
    %c0_i32_0 = arith.constant 0 : i32
    return %arg0, %c0_i32, %arg2 : i32, i32, i32
  }
  func.func @transform_1(%arg0: i32, %arg1: i32, %arg2: i32) -> (i32, i32, i32) {
    %c0_i32 = arith.constant 0 : i32
    %c0_i32_0 = arith.constant 0 : i32
    return %c0_i32, %arg2, %arg1 : i32, i32, i32
  }
  func.func @transform_2(%arg0: i32, %arg1: i32, %arg2: i32) -> (i32, i32) {
    %c0_i32 = arith.constant 0 : i32
    %c0_i32_0 = arith.constant 0 : i32
    return %c0_i32, %arg1 : i32, i32
  }
  func.func @transform_3(%arg0: i32, %arg1: i32, %arg2: i32) -> (i32, i32) {
    %c0_i32 = arith.constant 0 : i32
    %c0_i32_0 = arith.constant 0 : i32
    return %c0_i32, %arg1 : i32, i32
  }
  func.func @transform_4(%arg0: i32, %arg1: i32, %arg2: i32) -> (i32, i32, i32) {
    %c0_i32 = arith.constant 0 : i32
    %c0_i32_0 = arith.constant 0 : i32
    return %arg0, %c0_i32, %arg1 : i32, i32, i32
  }
}

</mosaic_0001>

<bundles_post_ra>
// kernel: tpu_custom_call.1
= control target key start
LH: loop header
LB: loop body
LE: loop exit
PB: predicated region body
PF: predicated region fallthrough
CT: control target
= control target key end

     0   :  { %9 = vsyncpa [#allocation4], 0  ;;  %s8577_s0 = inlined_call_operand.hbm [shape: bf16[2,404,128], index: 0, kind: input, shape index: {}]   ;;  %s8578_s1 = inlined_call_operand.hbm [shape: bf16[9,128,128], index: 1, kind: input, shape index: {}]   ;;  %s8579_s2 = inlined_call_operand.hbm [shape: f32[1,128], index: 2, kind: input, shape index: {}]   ;;  %s8580_s3 = inlined_call_operand.hbm [shape: f32[1,128], index: 3, kind: input, shape index: {}]   ;;  %s8581_s4 = inlined_call_operand.hbm [shape: f32[2,320,128], index: 4, kind: output, shape index: {}]  }
   0x1   :  { %11 = vsyncpa [#allocation4 + $0x1], 0 }
   0x2   :  { %12 = vsyncpa [#allocation7], 0 }
   0x3   :  { %13 = vsyncpa [#allocation10], 0 }
   0x4   :  { %14 = vsyncpa [#allocation5], 0 }
   0x5   :  { %16 = vsyncpa [#allocation5 + $0x1], 0  ;;  %s7796_s15 = smov 0   ;;  %s7798_s16 = smov 0  }
   0x6   :  { %s7800_s17 = smov 0   ;;  %s7802_s18 = smov 0  }
   0x7   :  { %s7804_s19 = smov 0   ;;  %s7806_s20 = smov 0  }
   0x8 LB: > { %s5821_s21 = sadd.s32 4294967295, %s7760_s20   ;;  %s5822_s22 = sadd.s32 4294967294, %s7760_s20   ;;  %s7760_s20 = sphi %s7806_s20, %s22_s20   ;;  %s7756_s19 = sphi %s7804_s19, %s8610_s19   ;;  %s7752_s18 = sphi %s7802_s18, %s8609_s18   ;;  %s7748_s17 = sphi %s7800_s17, %s8608_s17   ;;  %s7744_s16 = sphi %s7798_s16, %s8607_s16   ;;  %s7740_s15 = sphi %s7796_s15, %s8606_s15  }
   0x9   : > { %p63_p0 = scmp.ne.s32.totalorder %s7744_s16, %s7740_s15  ;;  %p7830_p1 = scmp.eq.s32.totalorder %s5821_s21, 0 }
   0xa   : > { %p7834_p2 = scmp.eq.s32.totalorder %s5821_s21, 1  ;;  %p175_p3 = scmp.eq.s32.totalorder %s5822_s22, 1 }
   0xb   : > { %s8588_s23 = scalar_select %p7830_p1, 1, 0 }
   0xc   : > { %s8589_s24 = scalar_select %p7834_p2, 1, 0 }
   0xd   : > { %p7840_p4 = por %p7830_p1, %p63_p0  ;;  %p5823_p5 = scmp.ge.s32.totalorder %s7760_s20, 1 }
   0xe   : > { %p7845_p6 = por %p175_p3, %p63_p0  ;;  %p182_p7 = scmp.lt.s32.totalorder %s7760_s20, 3 }
   0xf   : > { %s8590_s25 = scalar_select %p7840_p4, 1, 0 }
  0x10   : > { %s8591_s26 = scalar_select %p7845_p6, 1, 0 }
  0x11   : > { %p7850_p8 = pnand %p5823_p5, %p182_p7  ;;  %s7762_s28 = smov [#allocation6]  }
  0x12   : > { %8592 = sst [smem:[#allocation16_spill]] %s8591_s26  ;;  %s198_s29 = sshll.u32 %s7762_s28, 4  ;;  %s7854_s29 = int_to_ptr.vmem [resolvable:$true] %s198_s29 }
  0x13   : > { %s8593_s27 = scalar_select %p7850_p8, 1, 0 }
  0x14   : > { %p7209_p9 = pneg %p7850_p8  ;;  %s7763_s5 = smov [#allocation8]  }
  0x15   : > { %s214_s6 = sshll.u32 %s7763_s5, 4  ;;  %s7764_s7 = smov [#allocation9]   ;;  %s7865_s6 = int_to_ptr.vmem [resolvable:$true] %s214_s6 }
  0x16   : > { %p7861_p11 = pnand %p7209_p9, %p7830_p1  ;;  %s7867_s8 = sshll.u32 %s7764_s7, 4  ;;  %s228_s8 = int_to_ptr.vmem [resolvable:$true] %s7867_s8 }
  0x17   : > { %s7556_s11 = scalar_lea.hbm %s8578_s1, 9216 }
  0x18   : > { %p7557_p12 = scmp.ne.s32.totalorder %s8578_s1, %s7556_s11  ;;  %p7877_p13 = pneg %p7861_p11 }
  0x19   : > { %p7563_p5 = scmp.lt.u32.totalorder %s7556_s11, %s8578_s1 }
  0x1a   : > { %p7559_p0 = pnand %p7877_p13, %p7557_p12 }
  0x1c   : > { %p7560_p3 = pneg %p7559_p0 }
  0x1e   : > { %p7565_p7 = pnand %p7563_p5, %p7560_p3 }
  0x20   : > { %7568 = shalt.err (!%p7565_p7)
}
  0x21   : > { %s7569_s28 = scalar_lea.vmem %s7854_s29, 9216  ;;  %p7577_p1 = scmp.lt.s32.totalorder %s7854_s29, %s7854_s29 }
  0x22   : > { %p7570_p9 = scmp.ne.s32.totalorder %s7854_s29, %s7569_s28  ;;  %p7578_p4 = scmp.lt.s32.totalorder %s7569_s28, %s7569_s28 }
  0x24   : > { %p7572_p10 = pnand %p7570_p9, %p7877_p13  ;;  %p7579_p12 = por %p7578_p4, %p7577_p1 }
  0x26   : > { %p7573_p6 = pneg %p7572_p10 }
  0x28   : > { %p7580_p0 = pnand %p7579_p12, %p7573_p6 }
  0x2a   : > { %7583 = shalt.err (!%p7580_p0)
}
  0x2b   : > { %s8587_s5 = smov 64   ;;  %s7766_s7 = smov 4  }
  0x2c   : > { %7212 = dma.hbm_to_vmem [thread:$0]  (!%p7861_p11), %s8578_s1, 9216, %s7854_s29, [#allocation7], %s8587_s5, %s8587_s5, %s7766_s7  }
  0x2d   : > { %s7584_s13 = scalar_lea.hbm %s8579_s2, 16 }
  0x2e   : > { %p7585_p1 = scmp.ne.s32.totalorder %s8579_s2, %s7584_s13  ;;  %p7591_p10 = scmp.lt.u32.totalorder %s7584_s13, %s8579_s2 }
  0x30   : > { %p7587_p4 = pnand %p7585_p1, %p7877_p13 }
  0x32   : > { %p7588_p6 = pneg %p7587_p4 }
  0x34   : > { %p7593_p3 = pnand %p7591_p10, %p7588_p6 }
  0x36   : > { %7596 = shalt.err (!%p7593_p3)
}
  0x37   : > { %s7597_s29 = scalar_lea.vmem %s7865_s6, 16  ;;  %s7604_s9 = scalar_lea.vmem %s7865_s6, 32 }
  0x38   : > { %p7598_p5 = scmp.ne.s32.totalorder %s7865_s6, %s7597_s29  ;;  %p7605_p12 = scmp.lt.s32.totalorder %s7865_s6, %s7865_s6 }
  0x39   : > { %p7606_p0 = scmp.lt.s32.totalorder %s7604_s9, %s7597_s29 }
  0x3a   : > { %p7600_p7 = pnand %p7598_p5, %p7877_p13 }
  0x3b   : > { %p7607_p1 = por %p7606_p0, %p7605_p12 }
  0x3c   : > { %p7601_p9 = pneg %p7600_p7 }
  0x3e   : > { %p7608_p4 = pnand %p7607_p1, %p7601_p9 }
  0x40   : > { %7611 = shalt.err (!%p7608_p4)
}
  0x41   : > { %7215 = dma.hbm_to_vmem [thread:$0]  (!%p7861_p11), %s8579_s2, 16, %s7865_s6, [#allocation7]  }
  0x42   : > { %s7612_s13 = scalar_lea.hbm %s8580_s3, 16 }
  0x43   : > { %p7613_p6 = scmp.ne.s32.totalorder %s8580_s3, %s7612_s13  ;;  %p7619_p5 = scmp.lt.u32.totalorder %s7612_s13, %s8580_s3 }
  0x45   : > { %p7615_p10 = pnand %p7613_p6, %p7877_p13 }
  0x47   : > { %p7616_p3 = pneg %p7615_p10 }
  0x49   : > { %p7621_p7 = pnand %p7619_p5, %p7616_p3 }
  0x4b   : > { %7624 = shalt.err (!%p7621_p7)
}
  0x4c   : > { %s7625_s9 = scalar_lea.vmem %s228_s8, 16  ;;  %s7632_s6 = scalar_lea.vmem %s228_s8, 32 }
  0x4d   : > { %p7626_p9 = scmp.ne.s32.totalorder %s228_s8, %s7625_s9  ;;  %p7633_p1 = scmp.lt.s32.totalorder %s228_s8, %s228_s8 }
  0x4e   : > { %p7634_p4 = scmp.lt.s32.totalorder %s7632_s6, %s7625_s9 }
  0x4f   : > { %p7628_p12 = pnand %p7626_p9, %p7877_p13 }
  0x50   : > { %p7635_p8 = por %p7634_p4, %p7633_p1 }
  0x51   : > { %p7629_p0 = pneg %p7628_p12 }
  0x53   : > { %p7636_p2 = pnand %p7635_p8, %p7629_p0 }
  0x55   : > { %7639 = shalt.err (!%p7636_p2)
}
  0x56   : > { %7218 = dma.hbm_to_vmem [thread:$0]  (!%p7861_p11), %s8580_s3, 16, %s228_s8, [#allocation10]  }
  0x57   : > { %s50_s14 = sadd.s32 1, %s7748_s17  ;;  %s41_s11 = sadd.s32 1, %s7756_s19 }
  0x58   : > { %p57_p2 = scmp.ne.s32.totalorder %s7748_s17, %s7744_s16  ;;  %p43_p8 = scmp.ge.s32.totalorder %s41_s11, 2 }
  0x59   : > { %p58_p13 = scmp.eq.s32.totalorder %s7760_s20, 0  ;;  %p8596_p6 = scmp.ne.s32.totalorder %s8589_s24, 0 }
  0x5a   : > { %p7230_p3 = scmp.lt.s32.totalorder %s7760_s20, 2  ;;  %s8612_s11 = smov (%p43_p8, %s41_s11), 0 }
  0x5b   : > { %p7951_p10 = por %p8596_p6, %p57_p2  ;;  %p59_p5 = por %p58_p13, %p57_p2 }
  0x5c   : > { %s238_s12 = sand.u32 1, %s7748_s17   ;;  %s45_s13 = ssub.s32 %s7756_s19, %s8612_s11 }
  0x5d   : > { %p48_p7 = scmp.eq.s32.totalorder %s45_s13, 0  ;;  %s7188_s8 = smul.u32 204, %s238_s12 }
  0x5e   : > { %s7189_s21 = smul.u32 3264, %s7756_s19  ;;  %p7962_p11 = pnand %p7230_p3, %p59_p5 }
  0x5f   : > { %s7967_s24 = scalar_select %p48_p7, %s7748_s17, %s50_s14  }
  0x60   : > { %s7972_s9 = scalar_lea.hbm %s8577_s0, %s7189_s21  ;;  %s242_s6 = scalar_lea.vmem [#allocation3], %s7188_s8 }
  0x61   : > { %s250_s26 = sshll.u32 %s242_s6, 4  ;;  %s7976_s10 = scalar_lea.sflag [#allocation4], %s238_s12  ;;  %s7974_s26 = int_to_ptr.vmem [resolvable:$true] %s250_s26 }
  0x62   : > { %s7640_s13 = scalar_lea.hbm %s7972_s9, 3264  ;;  %p7642_p12 = pneg %p7962_p11 }
  0x63   : > { %p7641_p9 = scmp.ne.s32.totalorder %s7972_s9, %s7640_s13  ;;  %s7645_s28 = scalar_lea.hbm %s8577_s0, 6528 }
  0x64   : > { %p7646_p4 = scmp.lt.u32.totalorder %s7972_s9, %s8577_s0  ;;  %p7647_p2 = scmp.lt.u32.totalorder %s7645_s28, %s7640_s13 }
  0x65   : > { %p7643_p0 = pnand %p7642_p12, %p7641_p9  ;;  %p7649_p13 = scmp.lt.u32.totalorder %s7640_s13, %s7972_s9 }
  0x66   : > { %p7648_p8 = por %p7647_p2, %p7646_p4 }
  0x67   : > { %p7644_p1 = pneg %p7643_p0 }
  0x68   : > { %p7650_p6 = por %p7649_p13, %p7648_p8 }
  0x6a   : > { %p7651_p3 = pnand %p7650_p6, %p7644_p1 }
  0x6c   : > { %7654 = shalt.err (!%p7651_p3)
}
  0x6d   : > { %s7655_s12 = scalar_lea.vmem %s7974_s26, 3264  ;;  %s7767_s8 = smov [#allocation3]  }
  0x6e   : > { %p7656_p5 = scmp.ne.s32.totalorder %s7974_s26, %s7655_s12  ;;  %s7660_s6 = sshll.u32 %s7767_s8, 4  ;;  %s7661_s6 = int_to_ptr.vmem [resolvable:$false] %s7660_s6 }
  0x6f   : > { %s7662_s5 = scalar_lea.vmem %s7661_s6, 6528  ;;  %p7663_p0 = scmp.lt.s32.totalorder %s7974_s26, %s7661_s6 }
  0x70   : > { %p7658_p7 = pnand %p7656_p5, %p7642_p12  ;;  %p7664_p4 = scmp.lt.s32.totalorder %s7662_s5, %s7655_s12 }
  0x72   : > { %p7659_p9 = pneg %p7658_p7  ;;  %p7665_p2 = por %p7664_p4, %p7663_p0 }
  0x74   : > { %p7666_p8 = pnand %p7665_p2, %p7659_p9 }
  0x76   : > { %7669 = shalt.err (!%p7666_p8)
}
  0x77   : > { %s8599_s13 = smov 64   ;;  %p8600_p12 = scmp.ne.s32.totalorder %s8593_s27, 0 }
  0x78   : > { %7222 = dma.hbm_to_vmem [thread:$0]  (!%p7962_p11), %s7972_s9, 3264, %s7974_s26, %s7976_s10, %s8599_s13, %s8599_s13, %s7766_s7  }
  0x79   : > { %262 = sbr.rel (%p8600_p12) target bundleno = 758 (0x2f6), region = 36  ;;  %s8010_s14 = sand.u32 (!%p8600_p12), 1, %s7744_s16  }
  0x7a   : > { %s7190_s21 = smul.u32 (!%p8600_p12), 204, %s8010_s14  ;;  %s265_s28 = scalar_lea.sflag (!%p8600_p12), [#allocation4], %s8010_s14 }
  0x7b   : > { %p8601_p1 = scmp.ne.s32.totalorder (!%p8600_p12), %s8590_s25, 0 }
  0x7c   : > { %s8014_s29 = scalar_lea.vmem (!%p8600_p12), [#allocation3], %s7190_s21 }
  0x80   : > { %7723 = dma.done.wait (%p8601_p1), %s265_s28, 3264  }
  0x81   : > { %7725 = vsyncadd (%p8601_p1), %s265_s28, 4294964032  ;;  %p8602_p11 = scmp.ne.s32.totalorder %s8588_s23, 0 }
  0x83   : > { %7727 = dma.done.wait (%p8602_p11), [#allocation7], 9232  }
  0x84   : > { %7729 = vsyncadd (%p8602_p11), [#allocation7], 4294958064 }
  0x85   : > { %7731 = dma.done.wait (%p8602_p11), [#allocation10], 16  }
  0x86   : > { %7733 = vsyncadd (%p8602_p11), [#allocation10], 4294967280  ;;  %v7290_v0 = vld [vmem:[#allocation6] sm:$0xff]   ;;  %v7292_v2 = vld [vmem:[#allocation6 + $0x8] sm:$0xff]   ;;  %vm1089_vm0 = vcmask 1046528   ;;  %vm1673_vm1 = vcmask 1045504  }
  0x87   : > { %v7291_v1 = vld [vmem:[#allocation6 + $0x100] sm:$0xff]   ;;  %6348 = vmatprep.subr.bf16.mxu1 %v7290_v0  ;;  %v7293_v3 = vld [vmem:[#allocation6 + $0x108] sm:$0xff]   ;;  %v7294_v4 = vld [vmem:[#allocation6 + $0x10] sm:$0xff]   ;;  %s7191_s23 = smul.u32 320, %s8010_s14  ;;  %s7768_s12 = smov [#allocation11]  }
  0x88   : > { %6572 = vmatprep.subr.bf16.mxu0 %v7291_v1  ;;  %6349 = vmatpush3.bf16.msra.mxu1 %v7290_v0  ;;  %v7295_v5 = vld [vmem:[#allocation6 + $0x110] sm:$0xff]   ;;  %v7296_v6 = vld [vmem:[#allocation6 + $0x18] sm:$0xff]   ;;  %v7298_v8 = vld [vmem:[#allocation6 + $0x20] sm:$0xff]   ;;  %s7192_s27 = smul.u32 5120, %s7752_s18  ;;  %s5682_s18 = scalar_lea.sflag [#allocation5], %s8010_s14 }
  0x89   : > { %6573 = vmatpush3.bf16.msra.mxu0 %v7291_v1  ;;  %6350 = vmatprep.subr.bf16.mxu1 %v7292_v2  ;;  %v7297_v7 = vld [vmem:[#allocation6 + $0x118] sm:$0xff]   ;;  %v7299_v9 = vld [vmem:[#allocation6 + $0x120] sm:$0xff]   ;;  %v7300_v10 = vld [vmem:[#allocation6 + $0x28] sm:$0xff]   ;;  %s8396_s25 = scalar_lea.vmem [#allocation11], %s7191_s23  ;;  %s7674_s8 = sshll.u32 %s7768_s12, 4  ;;  %s7675_s8 = int_to_ptr.vmem [resolvable:$false] %s7674_s8 }
  0x8a   : > { %6574 = vmatprep.subr.bf16.mxu0 %v7293_v3  ;;  %v7301_v11 = vld [vmem:[#allocation6 + $0x128] sm:$0xff]   ;;  %v7302_v15 = vld [vmem:[#allocation6 + $0x30] sm:$0xff]   ;;  %v7304_v20 = vld [vmem:[#allocation6 + $0x38] sm:$0xff]   ;;  %s5696_s7 = sshll.u32 %s8396_s25, 4  ;;  %s8523_s26 = scalar_lea.hbm %s8581_s4, %s7192_s27  ;;  %s8525_s7 = int_to_ptr.vmem [resolvable:$true] %s5696_s7 }
  0x8b   : > { %v7306_v12 = vld [vmem:[%s8014_s29] sm:$0xff]   ;;  %v7307_v13 = vld [vmem:[%s8014_s29 + $0x14] sm:$0xfe]   ;;  %v7315_v23 = vld [vmem:[%s8014_s29 + $0x2c] sm:$0xff]   ;;  %s7670_s10 = scalar_lea.vmem %s8525_s7, 5120  ;;  %s7676_s6 = scalar_lea.vmem %s7675_s8, 10240 }
  0x8c   : > { %6351 = vmatpush3.bf16.msra.mxu1 %v7292_v2  ;;  %6364 = vmatprep.mubr.bf16.mxu1 %v7306_v12  ;;  %v7308_v14 = vld [vmem:[%s8014_s29 + $0x1c] sm:$0xff]   ;;  %v2795_v16 = vrot.slane %v7307_v13, 1  ;;  %v7311_v21 = vld [vmem:[%s8014_s29 + $0x24] sm:$0xff]   ;;  %v2800_v28 = vrot.slane %v7315_v23, 1  ;;  %v7314_v30 = vld [vmem:[%s8014_s29 + $0x10] sm:$0xff]   ;;  %p7671_p13 = scmp.ne.s32.totalorder %s8525_s7, %s7670_s10  ;;  %p7677_p5 = scmp.lt.s32.totalorder %s8525_s7, %s7675_s8 }
  0x8d   : > { %6575 = vmatpush3.bf16.msra.mxu0 %v7293_v3  ;;  %6352 = vmatprep.subr.bf16.mxu1 %v7294_v4  ;;  %v2796_v17 = vrot.slane %v7308_v14, 1  ;;  %v7303_v18 = vld [vmem:[#allocation6 + $0x130] sm:$0xff]   ;;  %v7305_v22 = vld [vmem:[#allocation6 + $0x138] sm:$0xff]   ;;  %v7310_v24 = vld [vmem:[#allocation6 + $0x40] sm:$0xff]   ;;  %v2798_v25 = vrot.slane %v7311_v21, 1  ;;  %p7678_p7 = scmp.lt.s32.totalorder %s7676_s6, %s7670_s10 }
  0x8e   : > { %6576 = vmatprep.subr.bf16.mxu0 %v7295_v5  ;;  %v7312_v26 = vld [vmem:[#allocation6 + $0x140] sm:$0xff]   ;;  %v7313_v29 = vld [vmem:[#allocation6 + $0x148] sm:$0xff]   ;;  %v7325_v38 = vld [vmem:[#allocation6 + $0x50] sm:$0xff]   ;;  %p7672_p6 = pnand %p7671_p13, %p7951_p10 }
  0x8f   : > { %v2797_v19 = vsel %vm1089_vm0, %v2795_v16, %v2796_v17  ;;  %v7309_v27 = vld [vmem:[%s8014_s29 + $0x8] sm:$0xff]   ;;  %v2799_v31 = vsel %vm1089_vm0, %v2796_v17, %v2798_v25  ;;  %v7317_v32 = vld [vmem:[%s8014_s29 + $0x34] sm:$0xff]   ;;  %v7321_v33 = vld [vmem:[%s8014_s29 + $0x3c] sm:$0xff]   ;;  %v2801_v34 = vsel %vm1089_vm0, %v2798_v25, %v2800_v28  ;;  %p7679_p9 = por %p7678_p7, %p7677_p5 }
  0x90   : > { %6353 = vmatpush3.bf16.msra.mxu1 %v7294_v4  ;;  %6588 = vmatprep.mubr.bf16.mxu0 %v2797_v19  ;;  %v7318_v35 = vld [vmem:[#allocation6 + $0x48] sm:$0xff]   ;;  %v2802_v37 = vrot.slane %v7317_v32, 1  ;;  %v7319_v39 = vld [vmem:[#allocation6 + $0x150] sm:$0xff]   ;;  %v2804_v40 = vrot.slane %v7321_v33, 1  ;;  %v7322_v42 = vld [vmem:[#allocation6 + $0x158] sm:$0xff]   ;;  %p7673_p3 = pneg %p7672_p6 }
  0x91   : > { %6577 = vmatpush3.bf16.msra.mxu0 %v7295_v5  ;;  %6354 = vmatprep.subr.bf16.mxu1 %v7296_v6  ;;  %v7316_v36 = vld [vmem:[%s8014_s29 + $0x18] sm:$0xff]   ;;  %v7320_v41 = vld [vmem:[%s8014_s29 + $0x20] sm:$0xff]   ;;  %v7328_v46 = vld [vmem:[%s8014_s29 + $0x4c] sm:$0xff]  }
  0x92   : > { %6578 = vmatprep.subr.bf16.mxu0 %v7297_v7  ;;  %v2803_v43 = vsel %vm1089_vm0, %v2800_v28, %v2802_v37  ;;  %v7324_v44 = vld [vmem:[%s8014_s29 + $0x44] sm:$0xff]   ;;  %v2805_v45 = vsel %vm1089_vm0, %v2802_v37, %v2804_v40  ;;  %v7326_v50 = vld [vmem:[#allocation6 + $0x160] sm:$0xff]   ;;  %v2808_v51 = vrot.slane %v7328_v46, 1  ;;  %p7680_p0 = pnand %p7679_p9, %p7673_p3 }
  0x93   : > { %v7332_v47 = vld [vmem:[#allocation6 + $0x58] sm:$0xff]   ;;  %v2806_v49 = vrot.slane %v7324_v44, 1  ;;  %v7331_v55 = vld [vmem:[#allocation6 + $0x168] sm:$0xff]   ;;  %v7333_v60 = vld [vmem:[#allocation6 + $0x170] sm:$0xff]  }
  0x94   : > { %6355 = vmatpush3.bf16.msra.mxu1 %v7296_v6  ;;  %v7323_v48 = vld [vmem:[%s8014_s29 + $0x28] sm:$0xff]   ;;  %v7327_v52 = vld [vmem:[%s8014_s29 + $0x30] sm:$0xff]   ;;  %v7335_v57 = vld [vmem:[%s8014_s29 + $0x5c] sm:$0xff]  }
  0x95   : > { %6579 = vmatpush3.bf16.msra.mxu0 %v7297_v7  ;;  %6356 = vmatprep.subr.bf16.mxu1 %v7298_v8  ;;  %v7330_v53 = vld [vmem:[%s8014_s29 + $0x54] sm:$0xff]   ;;  %v2807_v54 = vsel %vm1089_vm0, %v2804_v40, %v2806_v49  ;;  %v2809_v56 = vsel %vm1089_vm0, %v2806_v49, %v2808_v51  ;;  %v7334_v61 = vld [vmem:[%s8014_s29 + $0x40] sm:$0xff]   ;;  %v2812_v62 = vrot.slane %v7335_v57, 1  ;;  %v7347_v16 = vld [vmem:[%s8014_s29 + $0x2c] sm:$0xff]  }
  0x96   : > { %6580 = vmatprep.subr.bf16.mxu0 %v7299_v9  ;;  %v7329_v58 = vld [vmem:[%s8014_s29 + $0x38] sm:$0xff]   ;;  %v2810_v59 = vrot.slane %v7330_v53, 1  ;;  %v8055_v63 = vld [vmem:[%s8014_s29 + $0x64] sm:$0xff]   ;;  %v7339_v12 = vld [vmem:[%s8014_s29 + $0x50] sm:$0xff]   ;;  %v3383_v21 = vrot.slane %v7347_v16, 2 }
  0x97   : > { %v7343_v0 = vld [vmem:[#allocation6 + $0x60] sm:$0xff]   ;;  %v7338_v1 = vld [vmem:[#allocation6 + $0x178] sm:$0xff]   ;;  %v2814_v6 = vrot.slane %v8055_v63, 1  ;;  %v7356_v17 = vld [vmem:[#allocation6 + $0x70] sm:$0xff]  }
  0x98   : > { %6357 = vmatpush3.bf16.msra.mxu1 %v7298_v8  ;;  %v2811_v2 = vsel %vm1089_vm0, %v2808_v51, %v2810_v59  ;;  %v7340_v3 = vld [vmem:[%s8014_s29 + $0x14] sm:$0xfc]   ;;  %v2813_v4 = vsel %vm1089_vm0, %v2810_v59, %v2812_v62  ;;  %v7341_v5 = vld [vmem:[%s8014_s29 + $0x1c] sm:$0xff]   ;;  %v7344_v14 = vld [vmem:[%s8014_s29 + $0x24] sm:$0xff]  }
  0x99   : > { %6581 = vmatpush3.bf16.msra.mxu0 %v7299_v9  ;;  %6358 = vmatprep.subr.bf16.mxu1 %v7300_v10  ;;  %v3378_v7 = vrot.slane %v7340_v3, 2  ;;  %v7345_v8 = vld [vmem:[#allocation6 + $0x180] sm:$0xff]   ;;  %v3379_v9 = vrot.slane %v7341_v5, 2  ;;  %v2815_v13 = vsel %vm1089_vm0, %v2812_v62, %v2814_v6  ;;  %v3381_v19 = vrot.slane %v7344_v14, 2  ;;  %v7351_v23 = vld [vmem:[#allocation6 + $0x188] sm:$0xff]   ;;  %v7363_v37 = vld [vmem:[#allocation6 + $0x198] sm:$0xff]  }
  0x9a   : > { %6582 = vmatprep.subr.bf16.mxu0 %v7301_v11  ;;  %v7353_v25 = vld [vmem:[%s8014_s29 + $0x3c] sm:$0xff]   ;;  %v7348_v28 = vld [vmem:[%s8014_s29 + $0x68] sm:$0xff]   ;;  %v7352_v32 = vld [vmem:[%s8014_s29 + $0x70] sm:$0xff]  }
  0x9b   : > { %v7355_v33 = vld [vmem:[%s8014_s29 + $0x44] sm:$0xff]   ;;  %v7364_v51 = vld [vmem:[%s8014_s29 + $0x90] sm:$0xff]  }
  0x9c   : > { %6359 = vmatpush3.bf16.msra.mxu1 %v7300_v10  ;;  %v7350_v10 = vld [vmem:[#allocation6 + $0x68] sm:$0xff]   ;;  %v7360_v49 = vld [vmem:[%s8014_s29 + $0x88] sm:$0xff]  }
  0x9d   : > { %6583 = vmatpush3.bf16.msra.mxu0 %v7301_v11  ;;  %6360 = vmatprep.subr.bf16.mxu1 %v7302_v15  ;;  %v7336_v11 = vld [vmem:[%s8014_s29 + $0x48] sm:$0xff]   ;;  %v7373_v3 = vld [vmem:[%s8014_s29 + $0x74] sm:$0xff]  }
  0x9e   : > { %6584 = vmatprep.subr.bf16.mxu0 %v7303_v18  ;;  %v7367_v53 = vld [vmem:[%s8014_s29 + $0x64] sm:$0xff]   ;;  %v7370_v57 = vld [vmem:[%s8014_s29 + $0x6c] sm:$0xff]  }
  0x9f   : > { %v7386_v59 = vld [vmem:[#allocation6 + $0x1b0] sm:$0xff]  }
  0xa0   : > { %6361 = vmatpush3.bf16.msra.mxu1 %v7302_v15  ;;  %v3380_v15 = vsel %vm1673_vm1, %v3378_v7, %v3379_v9  ;;  %v7378_v16 = vld [vmem:[%s8014_s29 + $0x84] sm:$0xff]  }
  0xa1   : > { %6585 = vmatpush3.bf16.msra.mxu0 %v7303_v18  ;;  %6362 = vmatprep.subr.bf16.mxu1 %v7304_v20  ;;  %v7342_v18 = vld [vmem:[%s8014_s29 + $0x58] sm:$0xff]  }
  0xa2   : > { %6586 = vmatprep.subr.bf16.mxu0 %v7305_v22 }
  0xa4   : > { %6363 = vmatpush3.bf16.msra.mxu1 %v7304_v20  ;;  %v7346_v20 = vld [vmem:[%s8014_s29 + $0x60] sm:$0xff]  }
  0xa5   : > { %6587 = vmatpush3.bf16.msra.mxu0 %v7305_v22  ;;  %6404 = vmatprep.subr.bf16.mxu1 %v7310_v24  ;;  %v7349_v22 = vld [vmem:[%s8014_s29 + $0x34] sm:$0xff]  }
  0xa6   : > { %6628 = vmatprep.subr.bf16.mxu0 %v7312_v26 }
  0xa7   : > { %6365 = vmatmul.mubr.bf16.vlgmr.msra.gmra.mrb[0].mxu1 %v7309_v27  ;;  %v7362_v27 = vld [vmem:[#allocation6 + $0x78] sm:$0xff]  }
  0xa8   : > { %6589 = vmatmul.mubr.bf16.vlgmr.msra.gmra.mrb[0].mxu0 %v2799_v31  ;;  %6405 = vmatpush3.bf16.msra.mxu1 %v7310_v24  ;;  %v3382_v24 = vsel %vm1673_vm1, %v3379_v9, %v3381_v19  ;;  %v7357_v31 = vld [vmem:[#allocation6 + $0x190] sm:$0xff]  }
  0xa9   : > { %6629 = vmatpush3.bf16.msra.mxu0 %v7312_v26  ;;  %6368 = vmatprep.mubr.bf16.mxu1 %v7314_v30  ;;  %v3384_v26 = vsel %vm1673_vm1, %v3381_v19, %v3383_v21  ;;  %v3387_v30 = vrot.slane %v7353_v25, 2  ;;  %v7381_v19 = vld [vmem:[%s8014_s29 + $0x28] sm:$0xff]  }
  0xaa   : > { %6630 = vmatprep.subr.bf16.mxu0 %v7313_v29  ;;  %6592 = vmatprep.mubr.bf16.mxu0 %v2801_v34 }
  0xab   : > { %6406 = vmatprep.subr.bf16.mxu1 %v7318_v35 }
  0xac   : > { %6407 = vmatpush3.bf16.msra.mxu1 %v7318_v35  ;;  %v7359_v35 = vld [vmem:[%s8014_s29 + $0x4c] sm:$0xff]  }
  0xad   : > { %6631 = vmatpush3.bf16.msra.mxu0 %v7313_v29  ;;  %6408 = vmatprep.subr.bf16.mxu1 %v7325_v38  ;;  %v3385_v29 = vrot.slane %v7349_v22, 2  ;;  %v3391_v40 = vrot.slane %v7359_v35, 2 }
  0xae   : > { %6632 = vmatprep.subr.bf16.mxu0 %v7319_v39 }
  0xaf   : > { %6369 = vmatmul.mubr.bf16.gmra.mrb[4].mxu1 %v7316_v36  ;;  %v3386_v34 = vsel %vm1673_vm1, %v3383_v21, %v3385_v29  ;;  %v3388_v36 = vsel %vm1673_vm1, %v3385_v29, %v3387_v30  ;;  %v7382_v21 = vld [vmem:[%s8014_s29 + $0x8c] sm:$0xff]  }
  0xb0   : > { %6593 = vmatmul.mubr.bf16.gmra.mrb[4].mxu0 %v2803_v43  ;;  %6372 = vmatprep.mubr.bf16.mxu1 %v7320_v41  ;;  %v7374_v41 = vld [vmem:[#allocation6 + $0x1a0] sm:$0xff]   ;;  %v7358_v43 = vld [vmem:[%s8014_s29 + $0x80] sm:$0xff]   ;;  %v3407_v29 = vrot.slane %v7382_v21, 2 }
  0xb1   : > { %6633 = vmatpush3.bf16.msra.mxu0 %v7319_v39  ;;  %6596 = vmatprep.mubr.bf16.mxu0 %v2805_v45  ;;  %v3389_v39 = vrot.slane %v7355_v33, 2  ;;  %v7361_v45 = vld [vmem:[%s8014_s29 + $0x54] sm:$0xff]  }
  0xb2   : > { %6634 = vmatprep.subr.bf16.mxu0 %v7322_v42  ;;  %6409 = vmatpush3.bf16.msra.mxu1 %v7325_v38  ;;  %v8082_v38 = vld [vmem:[#allocation6 + $0x80] sm:$0xff]  }
  0xb3   : > { %6410 = vmatprep.subr.bf16.mxu1 %v7332_v47  ;;  %v3390_v44 = vsel %vm1673_vm1, %v3387_v30, %v3389_v39  ;;  %v3392_v46 = vsel %vm1673_vm1, %v3389_v39, %v3391_v40  ;;  %v7383_v30 = vld [vmem:[%s8014_s29 + $0x30] sm:$0xff]   ;;  %v7387_v33 = vld [vmem:[%s8014_s29 + $0x38] sm:$0xff]  }
  0xb4   : > { %v1101_v39 = vrot.slane %v7383_v30, 1  ;;  %v7409_v21 = vld [vmem:[%s8014_s29 + $0x78] sm:$0xff]   ;;  %v7411_v30 = vld [vmem:[%s8014_s29 + $0x80] sm:$0xff]  }
  0xb5   : > { %6635 = vmatpush3.bf16.msra.mxu0 %v7322_v42  ;;  %v7354_v42 = vld [vmem:[%s8014_s29 + $0x78] sm:$0xff]  }
  0xb6   : > { %6636 = vmatprep.subr.bf16.mxu0 %v7326_v50  ;;  %6411 = vmatpush3.bf16.msra.mxu1 %v7332_v47  ;;  %v7365_v47 = vld [vmem:[%s8014_s29 + $0x5c] sm:$0xff]  }
  0xb7   : > { %6373 = vmatmul.mubr.bf16.gmra.mrb[8].mxu1 %v7323_v48  ;;  %6412 = vmatprep.subr.bf16.mxu1 %v7343_v0  ;;  %v7380_v48 = vld [vmem:[#allocation6 + $0x1a8] sm:$0xff]  }
  0xb8   : > { %6597 = vmatmul.mubr.bf16.gmra.mrb[8].mxu0 %v2807_v54  ;;  %6376 = vmatprep.mubr.bf16.mxu1 %v7327_v52  ;;  %v3395_v52 = vrot.slane %v7365_v47, 2  ;;  %v7368_v54 = vld [vmem:[%s8014_s29] sm:$0xfe]   ;;  %v7393_v47 = vld [vmem:[%s8014_s29 + $0x48] sm:$0xff]  }
  0xb9   : > { %6637 = vmatpush3.bf16.msra.mxu0 %v7326_v50  ;;  %6600 = vmatprep.mubr.bf16.mxu0 %v2809_v56  ;;  %v3393_v50 = vrot.slane %v7361_v45, 2  ;;  %v1090_v62 = vrot.slane %v7368_v54, 1  ;;  %v7390_v45 = vld [vmem:[%s8014_s29 + $0xa4] sm:$0xff]  }
  0xba   : > { %6638 = vmatprep.subr.bf16.mxu0 %v7331_v55  ;;  %6413 = vmatpush3.bf16.msra.mxu1 %v7343_v0  ;;  %v3413_v54 = vrot.slane %v7390_v45, 2  ;;  %v7418_v45 = vld [vmem:[%s8014_s29 + $0x60] sm:$0xff]  }
  0xbb   : > { %6414 = vmatprep.subr.bf16.mxu1 %v7350_v10  ;;  %v3394_v56 = vsel %vm1673_vm1, %v3391_v40, %v3393_v50 }
  0xbd   : > { %6639 = vmatpush3.bf16.msra.mxu0 %v7331_v55  ;;  %v7369_v55 = vld [vmem:[%s8014_s29 + $0x8] sm:$0xff]  }
  0xbe   : > { %6640 = vmatprep.subr.bf16.mxu0 %v7333_v60  ;;  %6415 = vmatpush3.bf16.msra.mxu1 %v7350_v10  ;;  %v1091_v0 = vrot.slane %v7369_v55, 1  ;;  %v7376_v10 = vld [vmem:[%s8014_s29 + $0x7c] sm:$0xff]   ;;  %v1107_v55 = vrot.slane %v7393_v47, 1 }
  0xbf   : > { %6377 = vmatmul.mubr.bf16.gmra.mrb[12].mxu1 %v7329_v58  ;;  %6416 = vmatprep.subr.bf16.mxu1 %v7356_v17  ;;  %v3396_v58 = vsel %vm1673_vm1, %v3393_v50, %v3395_v52  ;;  %v3403_v14 = vrot.slane %v7376_v10, 2  ;;  %v7394_v50 = vld [vmem:[%s8014_s29 + $0xac] sm:$0xff]   ;;  %v7399_v10 = vld [vmem:[%s8014_s29 + $0x60] sm:$0xff]  }
  0xc0   : > { %6601 = vmatmul.mubr.bf16.gmra.mrb[12].mxu0 %v2811_v2  ;;  %6380 = vmatprep.mubr.bf16.mxu1 %v7334_v61  ;;  %v7366_v61 = vld [vmem:[%s8014_s29 + $0x98] sm:$0xff]   ;;  %v7371_v2 = vld [vmem:[%s8014_s29 + $0x10] sm:$0xff]   ;;  %v1092_v7 = vsel %vm1089_vm0, %v1090_v62, %v1091_v0 }
  0xc1   : > { %6604 = vmatprep.mubr.bf16.mxu0 %v2813_v4  ;;  %6641 = vmatpush3.bf16.msra.mxu0 %v7333_v60  ;;  %v3397_v60 = vrot.slane %v7367_v53, 2  ;;  %v7392_v4 = vld [vmem:[#allocation6 + $0x1b8] sm:$0xff]   ;;  %v7443_v47 = vld [vmem:[#allocation6 + $0x1f0] sm:$0xff]  }
  0xc2   : > { %6642 = vmatprep.subr.bf16.mxu0 %v7338_v1  ;;  %6417 = vmatpush3.bf16.msra.mxu1 %v7356_v17 }
  0xc3   : > { %6418 = vmatprep.subr.bf16.mxu1 %v7362_v27  ;;  %v3398_v5 = vsel %vm1673_vm1, %v3395_v52, %v3397_v60  ;;  %v7407_v52 = vld [vmem:[#allocation6 + $0xa8] sm:$0xff]  }
  0xc5   : > { %6643 = vmatpush3.bf16.msra.mxu0 %v7338_v1  ;;  %v3399_v1 = vrot.slane %v7370_v57, 2  ;;  %v7413_v57 = vld [vmem:[#allocation6 + $0xb0] sm:$0xff]  }
  0xc6   : > { %6684 = vmatprep.subr.bf16.mxu0 %v7345_v8  ;;  %6419 = vmatpush3.bf16.msra.mxu1 %v7362_v27  ;;  %v1099_v27 = vrot.slane %v7381_v19, 1  ;;  %v7405_v19 = vld [vmem:[%s8014_s29 + $0x70] sm:$0xff]  }
  0xc7   : > { %6381 = vmatmul.mubr.bf16.gmra.mrb[16].mxu1 %v7336_v11  ;;  %6460 = vmatprep.subr.bf16.mxu1 %v8082_v38  ;;  %v3400_v9 = vsel %vm1673_vm1, %v3397_v60, %v3399_v1  ;;  %v1093_v11 = vrot.slane %v7371_v2, 1  ;;  %v7395_v60 = vld [vmem:[%s8014_s29 + $0x50] sm:$0xff]  }
  0xc8   : > { %6605 = vmatmul.mubr.bf16.gmra.mrb[16].mxu0 %v2815_v13  ;;  %6384 = vmatprep.mubr.bf16.mxu1 %v7339_v12  ;;  %v3401_v12 = vrot.slane %v7373_v3, 2  ;;  %v7419_v2 = vld [vmem:[#allocation6 + $0xb8] sm:$0xff]   ;;  %v1109_v3 = vrot.slane %v7395_v60, 1 }
  0xc9   : > { %6644 = vmatprep.mubr.bf16.mxu0 %v3380_v15  ;;  %v7377_v15 = vld [vmem:[%s8014_s29 + $0x20] sm:$0xff]   ;;  %v1094_v17 = vsel %vm1089_vm0, %v1091_v0, %v1093_v11  ;;  %v7397_v0 = vld [vmem:[%s8014_s29 + $0x58] sm:$0xff]   ;;  %v7428_v60 = vld [vmem:[%s8014_s29 + $0x10] sm:$0xff]  }
  0xca   : > { %v1097_v25 = vrot.slane %v7377_v15, 1 }
  0xcc   : > { %v1100_v35 = vsel %vm1089_vm0, %v1097_v25, %v1099_v27 }
  0xcf   : > { %6385 = vmatmul.mubr.bf16.gmra.mrb[20].mxu1 %v7342_v18  ;;  %v7379_v18 = vld [vmem:[#allocation6 + $0x88] sm:$0xff]  }
  0xd0   : > { %6645 = vmatmul.mubr.bf16.vlgmr.msra.gmra.mrb[0].mxu0 %v3382_v24  ;;  %6388 = vmatprep.mubr.bf16.mxu1 %v7346_v20  ;;  %v3402_v20 = vsel %vm1673_vm1, %v3399_v1, %v3401_v12  ;;  %v8115_v24 = vld [vmem:[#allocation6 + $0x1c0] sm:$0xff]  }
  0xd1   : > { %6685 = vmatpush3.bf16.msra.mxu0 %v7345_v8  ;;  %6648 = vmatprep.mubr.bf16.mxu0 %v3384_v26  ;;  %v7375_v8 = vld [vmem:[%s8014_s29 + $0x18] sm:$0xff]   ;;  %v3405_v26 = vrot.slane %v7378_v16, 2  ;;  %v7401_v16 = vld [vmem:[%s8014_s29 + $0x30] sm:$0xff]  }
  0xd2   : > { %6686 = vmatprep.subr.bf16.mxu0 %v7351_v23  ;;  %v1095_v13 = vrot.slane %v7375_v8, 1  ;;  %v7398_v8 = vld [vmem:[%s8014_s29 + $0x28] sm:$0xff]  }
  0xd4   : > { %v1096_v22 = vsel %vm1089_vm0, %v1093_v11, %v1095_v13 }
  0xd5   : > { %6687 = vmatpush3.bf16.msra.mxu0 %v7351_v23  ;;  %v3404_v23 = vsel %vm1673_vm1, %v3401_v12, %v3403_v14 }
  0xd6   : > { %6688 = vmatprep.subr.bf16.mxu0 %v7357_v31 }
  0xd7   : > { %6389 = vmatmul.mubr.bf16.gmra.mrb[24].mxu1 %v7348_v28  ;;  %v7385_v28 = vld [vmem:[#allocation6 + $0x90] sm:$0xff]  }
  0xd8   : > { %6649 = vmatmul.mubr.bf16.gmra.mrb[4].mxu0 %v3386_v34  ;;  %6392 = vmatprep.mubr.bf16.mxu1 %v7352_v32  ;;  %v1098_v32 = vsel %vm1089_vm0, %v1095_v13, %v1097_v25  ;;  %v3406_v34 = vsel %vm1673_vm1, %v3403_v14, %v3405_v26  ;;  %v7403_v13 = vld [vmem:[%s8014_s29 + $0x68] sm:$0xff]   ;;  %v1113_v14 = vrot.slane %v7399_v10, 1  ;;  %v1119_v25 = vrot.slane %v7409_v21, 1 }
  0xd9   : > { %6652 = vmatprep.mubr.bf16.mxu0 %v3388_v36  ;;  %6689 = vmatpush3.bf16.msra.mxu0 %v7357_v31  ;;  %v7384_v31 = vld [vmem:[%s8014_s29 + $0x94] sm:$0xff]   ;;  %v7388_v36 = vld [vmem:[%s8014_s29 + $0x9c] sm:$0xff]   ;;  %v1115_v15 = vrot.slane %v7403_v13, 1 }
  0xda   : > { %6690 = vmatprep.subr.bf16.mxu0 %v7363_v37  ;;  %v3409_v40 = vrot.slane %v7384_v31, 2 }
  0xdd   : > { %6691 = vmatpush3.bf16.msra.mxu0 %v7363_v37  ;;  %v3408_v37 = vsel %vm1673_vm1, %v3405_v26, %v3407_v29  ;;  %v7406_v26 = vld [vmem:[%s8014_s29 + $0x40] sm:$0xff]  }
  0xde   : > { %6692 = vmatprep.subr.bf16.mxu0 %v7374_v41 }
  0xdf   : > { %6393 = vmatmul.mubr.bf16.gmra.mrb[28].mxu1 %v7354_v42  ;;  %v3411_v42 = vrot.slane %v7388_v36, 2  ;;  %v7412_v36 = vld [vmem:[%s8014_s29 + $0x50] sm:$0xff]  }
  0xe0   : > { %6653 = vmatmul.mubr.bf16.gmra.mrb[8].mxu0 %v3390_v44  ;;  %6396 = vmatprep.mubr.bf16.mxu1 %v7358_v43  ;;  %v7389_v43 = vld [vmem:[%s8014_s29 + $0x40] sm:$0xff]   ;;  %v7400_v44 = vld [vmem:[#allocation6 + $0xa0] sm:$0xff]  }
  0xe1   : > { %6656 = vmatprep.mubr.bf16.mxu0 %v3392_v46  ;;  %6693 = vmatpush3.bf16.msra.mxu0 %v7374_v41  ;;  %v1103_v41 = vrot.slane %v7387_v33, 1  ;;  %v1102_v46 = vsel %vm1089_vm0, %v1099_v27, %v1101_v39  ;;  %v1105_v53 = vrot.slane %v7389_v43, 1  ;;  %v7414_v27 = vld [vmem:[#allocation6 + $0x1d0] sm:$0xff]   ;;  %v7420_v33 = vld [vmem:[#allocation6 + $0x1d8] sm:$0xff]  }
  0xe2   : > { %6694 = vmatprep.subr.bf16.mxu0 %v7380_v48 }
  0xe3   : > { %v1108_v62 = vsel %vm1089_vm0, %v1105_v53, %v1107_v55 }
  0xe5   : > { %6695 = vmatpush3.bf16.msra.mxu0 %v7380_v48  ;;  %v3410_v48 = vsel %vm1673_vm1, %v3407_v29, %v3409_v40 }
  0xe6   : > { %6696 = vmatprep.subr.bf16.mxu0 %v7386_v59 }
  0xe7   : > { %6397 = vmatmul.mubr.bf16.gmra.mrb[32].mxu1 %v7360_v49  ;;  %v1104_v49 = vsel %vm1089_vm0, %v1101_v39, %v1103_v41  ;;  %v7417_v39 = vld [vmem:[%s8014_s29 + $0x90] sm:$0xff]  }
  0xe8   : > { %6657 = vmatmul.mubr.bf16.gmra.mrb[12].mxu0 %v3394_v56  ;;  %6400 = vmatprep.mubr.bf16.mxu1 %v7364_v51  ;;  %v3412_v51 = vsel %vm1673_vm1, %v3409_v40, %v3411_v42  ;;  %v3415_v56 = vrot.slane %v7394_v50, 2  ;;  %v1125_v43 = vrot.slane %v7417_v39, 1  ;;  %v7426_v50 = vld [vmem:[%s8014_s29 + $0x8] sm:$0xff]  }
  0xe9   : > { %6660 = vmatprep.mubr.bf16.mxu0 %v3396_v58  ;;  %6697 = vmatpush3.bf16.msra.mxu0 %v7386_v59  ;;  %v7396_v58 = vld [vmem:[%s8014_s29 + $0xb4] ss:$0 sps:$4 sm:$0x33]   ;;  %v1106_v59 = vsel %vm1089_vm0, %v1103_v41, %v1105_v53  ;;  %v7421_v41 = vld [vmem:[%s8014_s29 + $0x98] sm:$0xff]  }
  0xea   : > { %6698 = vmatprep.subr.bf16.mxu0 %v7392_v4  ;;  %v3416_v1 = vsel %vm1673_vm1, %v3413_v54, %v3415_v56  ;;  %v7449_v53 = vld [vmem:[#allocation6 + $0x1f8] sm:$0xff]  }
  0xed   : > { %6699 = vmatpush3.bf16.msra.mxu0 %v7392_v4  ;;  %v3417_v4 = vrot.slane %v7396_v58, 2  ;;  %v7424_v58 = vld [vmem:[%s8014_s29 + $0x70] sm:$0xff]  }
  0xee   : > { %6740 = vmatprep.subr.bf16.mxu0 %v8115_v24 }
  0xef   : > { %6401 = vmatmul.mubr.bf16.gmra.mrb[36].mxu1 %v7366_v61  ;;  %v3414_v61 = vsel %vm1673_vm1, %v3411_v42, %v3413_v54  ;;  %v3418_v11 = vsel %vm1673_vm1, %v3415_v56, %v3417_v4  ;;  %v7437_v42 = vld [vmem:[#allocation6 + $0x1e8] sm:$0xff]   ;;  %v1675_v56 = vrot.slane %v7426_v50, 2 }
  0xf0   : > { %6661 = vmatmul.mubr.bf16.gmra.mrb[16].mxu0 %v3398_v5  ;;  %6420 = vmatprep.mubr.bf16.mxu1 %v1092_v7  ;;  %v1111_v5 = vrot.slane %v7397_v0, 1  ;;  %v8142_v7 = vld [vmem:[#allocation6 + $0xc0] sm:$0xff]  }
  0xf1   : > { %6664 = vmatprep.mubr.bf16.mxu0 %v3400_v9  ;;  %v1110_v9 = vsel %vm1089_vm0, %v1107_v55, %v1109_v3  ;;  %v7432_v0 = vld [vmem:[%s8014_s29 + $0x18] sm:$0xff]  }
  0xf2   : > { %v1112_v12 = vsel %vm1089_vm0, %v1109_v3, %v1111_v5  ;;  %v7430_v3 = vld [vmem:[%s8014_s29 + $0x80] sm:$0xff]   ;;  %v7459_v50 = vld [vmem:[%s8014_s29 + $0x38] sm:$0xff]  }
  0xf7   : > { %6421 = vmatmul.mubr.bf16.vlgmr.msra.gmra.mrb[0].mxu1 %v1094_v17  ;;  %v7404_v17 = vld [vmem:[%s8014_s29 + $0x38] sm:$0xff]  }
  0xf8   : > { %6665 = vmatmul.mubr.bf16.gmra.mrb[20].mxu0 %v3402_v20  ;;  %6461 = vmatpush3.bf16.msra.mxu1 %v8082_v38  ;;  %v7391_v38 = vld [vmem:[#allocation6 + $0x98] sm:$0xff]   ;;  %v1116_v20 = vsel %vm1089_vm0, %v1113_v14, %v1115_v15 }
  0xf9   : > { %6424 = vmatprep.mubr.bf16.mxu1 %v1096_v22  ;;  %6668 = vmatprep.mubr.bf16.mxu0 %v3404_v23  ;;  %v7408_v22 = vld [vmem:[#allocation6 + $0x1c8] sm:$0xff]   ;;  %v1117_v23 = vrot.slane %v7405_v19, 1 }
  0xfa   : > { %6462 = vmatprep.subr.bf16.mxu1 %v7379_v18 }
  0xfb   : > { %v1118_v29 = vsel %vm1089_vm0, %v1115_v15, %v1117_v23  ;;  %v1120_v31 = vsel %vm1089_vm0, %v1117_v23, %v1119_v25  ;;  %v7435_v15 = vld [vmem:[%s8014_s29 + $0x90] sm:$0xff]   ;;  %v7441_v23 = vld [vmem:[%s8014_s29 + $0xa0] sm:$0xff]  }
  0xfc   : > { %6463 = vmatpush3.bf16.msra.mxu1 %v7379_v18  ;;  %v1114_v18 = vsel %vm1089_vm0, %v1111_v5, %v1113_v14  ;;  %v7433_v5 = vld [vmem:[%s8014_s29 + $0x88] sm:$0xff]  }
  0xfd   : > { %6464 = vmatprep.subr.bf16.mxu1 %v7385_v28  ;;  %v7442_v14 = vld [vmem:[#allocation6 + $0xd0] sm:$0xff]  }
  0xff   : > { %6425 = vmatmul.mubr.bf16.gmra.mrb[4].mxu1 %v1098_v32  ;;  %v7415_v32 = vld [vmem:[%s8014_s29 + $0x88] sm:$0xff]  }
 0x100   : > { %6669 = vmatmul.mubr.bf16.gmra.mrb[24].mxu0 %v3406_v34  ;;  %6428 = vmatprep.mubr.bf16.mxu1 %v1100_v35  ;;  %v1123_v34 = vrot.slane %v7415_v32, 1  ;;  %v7431_v35 = vld [vmem:[#allocation6 + $0x1e0] sm:$0xff]  }
 0x101   : > { %6672 = vmatprep.mubr.bf16.mxu0 %v3408_v37  ;;  %6465 = vmatpush3.bf16.msra.mxu1 %v7385_v28  ;;  %v7410_v28 = vld [vmem:[%s8014_s29 + $0x48] sm:$0xff]   ;;  %v7416_v37 = vld [vmem:[%s8014_s29 + $0x58] sm:$0xff]  }
 0x102   : > { %6466 = vmatprep.subr.bf16.mxu1 %v7391_v38 }
 0x105   : > { %6467 = vmatpush3.bf16.msra.mxu1 %v7391_v38 }
 0x106   : > { %6468 = vmatprep.subr.bf16.mxu1 %v7400_v44 }
 0x107   : > { %6429 = vmatmul.mubr.bf16.gmra.mrb[8].mxu1 %v1102_v46  ;;  %v7423_v46 = vld [vmem:[%s8014_s29 + $0xa0] ss:$0 sps:$4 sm:$0x11]  }
 0x108   : > { %6673 = vmatmul.mubr.bf16.gmra.mrb[28].mxu0 %v3410_v48  ;;  %6432 = vmatprep.mubr.bf16.mxu1 %v1104_v49  ;;  %v7422_v48 = vld [vmem:[%s8014_s29 + $0x68] sm:$0xff]   ;;  %v1126_v49 = vsel %vm1089_vm0, %v1123_v34, %v1125_v43  ;;  %v1129_v54 = vrot.slane %v7423_v46, 1 }
 0x109   : > { %6676 = vmatprep.mubr.bf16.mxu0 %v3412_v51  ;;  %6469 = vmatpush3.bf16.msra.mxu1 %v7400_v44  ;;  %v1127_v44 = vrot.slane %v7421_v41, 1  ;;  %v7456_v41 = vld [vmem:[%s8014_s29 + $0x30] sm:$0xff]  }
 0x10a   : > { %6470 = vmatprep.subr.bf16.mxu1 %v7407_v52 }
 0x10b   : > { %v1128_v51 = vsel %vm1089_vm0, %v1125_v43, %v1127_v44 }
 0x10d   : > { %6471 = vmatpush3.bf16.msra.mxu1 %v7407_v52  ;;  %v7425_v52 = vld [vmem:[%s8014_s29] sm:$0xfc]  }
 0x10e   : > { %6472 = vmatprep.subr.bf16.mxu1 %v7413_v57  ;;  %v1674_v55 = vrot.slane %v7425_v52, 2  ;;  %v7461_v52 = vld [vmem:[%s8014_s29 + $0x68] sm:$0xff]  }
 0x10f   : > { %6433 = vmatmul.mubr.bf16.gmra.mrb[12].mxu1 %v1106_v59  ;;  %v1130_v59 = vsel %vm1089_vm0, %v1127_v44, %v1129_v54  ;;  %v7462_v54 = vld [vmem:[%s8014_s29 + $0x40] sm:$0xff]  }
 0x110   : > { %6677 = vmatmul.mubr.bf16.gmra.mrb[32].mxu0 %v3414_v61  ;;  %6436 = vmatprep.mubr.bf16.mxu1 %v1108_v62  ;;  %v1676_v61 = vsel %vm1673_vm1, %v1674_v55, %v1675_v56  ;;  %v7427_v62 = vld [vmem:[%s8014_s29 + $0x78] sm:$0xff]  }
 0x111   : > { %6680 = vmatprep.mubr.bf16.mxu0 %v3416_v1  ;;  %6473 = vmatpush3.bf16.msra.mxu1 %v7413_v57  ;;  %v8177_v57 = vld [vmem:[#allocation6 + $0x200] sm:$0xff]   ;;  %v1677_v1 = vrot.slane %v7428_v60, 2  ;;  %v4504_v60 = vrot.slane %v7462_v54, 1 }
 0x112   : > { %6474 = vmatprep.subr.bf16.mxu1 %v7419_v2  ;;  %v8221_v55 = vld [vmem:[#allocation6 + $0x100] sm:$0xff]  }
 0x113   : > { %v1678_v4 = vsel %vm1673_vm1, %v1675_v56, %v1677_v1  ;;  %v7486_v54 = vld [vmem:[%s8014_s29 + $0x88] sm:$0xff]  }
 0x115   : > { %6475 = vmatpush3.bf16.msra.mxu1 %v7419_v2  ;;  %v1679_v2 = vrot.slane %v7432_v0, 2 }
 0x116   : > { %6516 = vmatprep.subr.bf16.mxu1 %v8142_v7 }
 0x117   : > { %6437 = vmatmul.mubr.bf16.gmra.mrb[16].mxu1 %v1110_v9  ;;  %v7438_v9 = vld [vmem:[%s8014_s29 + $0x28] sm:$0xff]   ;;  %v1680_v10 = vsel %vm1673_vm1, %v1677_v1, %v1679_v2  ;;  %v7466_v1 = vld [vmem:[#allocation6 + $0x208] sm:$0xff]  }
 0x118   : > { %6681 = vmatmul.mubr.bf16.gmra.mrb[36].mxu0 %v3418_v11  ;;  %6440 = vmatprep.mubr.bf16.mxu1 %v1112_v12  ;;  %v7436_v11 = vld [vmem:[#allocation6 + $0xc8] sm:$0xff]   ;;  %v1683_v13 = vrot.slane %v7438_v9, 2 }
 0x119   : > { %6700 = vmatprep.mubr.bf16.mxu0 %v7398_v8  ;;  %v7434_v8 = vld [vmem:[%s8014_s29 + $0x20] sm:$0xff]  }
 0x11a   : > { %v1681_v12 = vrot.slane %v7434_v8, 2  ;;  %v7468_v8 = vld [vmem:[%s8014_s29 + $0x50] sm:$0xff]  }
 0x11c   : > { %v1684_v19 = vsel %vm1673_vm1, %v1681_v12, %v1683_v13 }
 0x11f   : > { %6441 = vmatmul.mubr.bf16.gmra.mrb[20].mxu1 %v1114_v18  ;;  %v7440_v18 = vld [vmem:[%s8014_s29 + $0x30] sm:$0xff]  }
 0x120   : > { %6701 = vmatmul.mubr.bf16.vlgmr.msra.gmra.mrb[0].mxu0 %v7401_v16  ;;  %6444 = vmatprep.mubr.bf16.mxu1 %v1116_v20  ;;  %v7439_v16 = vld [vmem:[%s8014_s29 + $0x98] sm:$0xff]   ;;  %v1685_v21 = vrot.slane %v7440_v18, 2 }
 0x121   : > { %6741 = vmatpush3.bf16.msra.mxu0 %v8115_v24  ;;  %6704 = vmatprep.mubr.bf16.mxu0 %v7404_v17  ;;  %v1121_v24 = vrot.slane %v7411_v30, 1  ;;  %v1682_v17 = vsel %vm1673_vm1, %v1679_v2, %v1681_v12  ;;  %v7444_v20 = vld [vmem:[%s8014_s29 + $0x38] sm:$0xff]   ;;  %v7450_v30 = vld [vmem:[%s8014_s29 + $0x48] sm:$0xff]   ;;  %v4508_v12 = vrot.slane %v7468_v8, 1 }
 0x122   : > { %6742 = vmatprep.subr.bf16.mxu0 %v7408_v22 }
 0x123   : > { %v1122_v38 = vsel %vm1089_vm0, %v1119_v25, %v1121_v24  ;;  %v1124_v40 = vsel %vm1089_vm0, %v1121_v24, %v1123_v34  ;;  %v7458_v25 = vld [vmem:[#allocation6 + $0xe0] sm:$0xff]   ;;  %v7471_v34 = vld [vmem:[#allocation6 + $0xf0] sm:$0xff]  }
 0x124   : > { %v7447_v24 = vld [vmem:[%s8014_s29 + $0xb0] sm:$0xff]  }
 0x125   : > { %6743 = vmatpush3.bf16.msra.mxu0 %v7408_v22  ;;  %v1687_v22 = vrot.slane %v7444_v20, 2  ;;  %v7474_v20 = vld [vmem:[%s8014_s29 + $0x60] sm:$0xff]  }
 0x126   : > { %6744 = vmatprep.subr.bf16.mxu0 %v7414_v27 }
 0x127   : > { %6445 = vmatmul.mubr.bf16.gmra.mrb[24].mxu1 %v1118_v29  ;;  %v1688_v29 = vsel %vm1673_vm1, %v1685_v21, %v1687_v22 }
 0x128   : > { %6705 = vmatmul.mubr.bf16.gmra.mrb[4].mxu0 %v7406_v26  ;;  %6448 = vmatprep.mubr.bf16.mxu1 %v1120_v31  ;;  %v7445_v26 = vld [vmem:[%s8014_s29 + $0xa8] sm:$0xff]   ;;  %v7465_v31 = vld [vmem:[#allocation6 + $0xe8] sm:$0xff]  }
 0x129   : > { %6708 = vmatprep.mubr.bf16.mxu0 %v7410_v28  ;;  %6745 = vmatpush3.bf16.msra.mxu0 %v7414_v27  ;;  %v1686_v27 = vsel %vm1673_vm1, %v1683_v13, %v1685_v21  ;;  %v7446_v28 = vld [vmem:[%s8014_s29 + $0x40] sm:$0xff]  }
 0x12a   : > { %6746 = vmatprep.subr.bf16.mxu0 %v7420_v33  ;;  %v1689_v32 = vrot.slane %v7446_v28, 2  ;;  %v7469_v13 = vld [vmem:[%s8014_s29 + $0x80] sm:$0xff]   ;;  %v7476_v28 = vld [vmem:[%s8014_s29 + $0x68] sm:$0xff]  }
 0x12b   : > { %v1705_v21 = vrot.slane %v7469_v13, 2  ;;  %v7550_v13 = vld [vmem:[#allocation6 + $0x110] sm:$0xff]  }
 0x12d   : > { %6747 = vmatpush3.bf16.msra.mxu0 %v7420_v33  ;;  %v1691_v33 = vrot.slane %v7450_v30, 2  ;;  %v7479_v30 = vld [vmem:[%s8014_s29 + $0x98] sm:$0xff]  }
 0x12e   : > { %6748 = vmatprep.subr.bf16.mxu0 %v7431_v35 }
 0x12f   : > { %6449 = vmatmul.mubr.bf16.gmra.mrb[28].mxu1 %v1122_v38  ;;  %v7454_v38 = vld [vmem:[%s8014_s29 + $0x58] sm:$0xff]   ;;  %v1692_v39 = vsel %vm1673_vm1, %v1689_v32, %v1691_v33 }
 0x130   : > { %6709 = vmatmul.mubr.bf16.gmra.mrb[8].mxu0 %v7412_v36  ;;  %6452 = vmatprep.mubr.bf16.mxu1 %v1124_v40  ;;  %v7452_v36 = vld [vmem:[%s8014_s29 + $0x50] sm:$0xff]   ;;  %v7455_v40 = vld [vmem:[%s8014_s29 + $0x28] sm:$0xfe]   ;;  %v1695_v44 = vrot.slane %v7454_v38, 2 }
 0x131   : > { %6712 = vmatprep.mubr.bf16.mxu0 %v7416_v37  ;;  %6749 = vmatpush3.bf16.msra.mxu0 %v7431_v35  ;;  %v7451_v35 = vld [vmem:[%s8014_s29 + $0xb8] sm:$0xff]   ;;  %v1690_v37 = vsel %vm1673_vm1, %v1687_v22, %v1689_v32  ;;  %v1693_v43 = vrot.slane %v7452_v36, 2  ;;  %v4499_v46 = vrot.slane %v7455_v40, 1  ;;  %v4514_v36 = vrot.slane %v7476_v28, 1 }
 0x132   : > { %6750 = vmatprep.subr.bf16.mxu0 %v7437_v42  ;;  %v7497_v40 = vld [vmem:[#allocation6 + $0x230] sm:$0xff]   ;;  %v7503_v28 = vld [vmem:[%s8014_s29 + $0x54] sm:$0xff]  }
 0x135   : > { %6751 = vmatpush3.bf16.msra.mxu0 %v7437_v42  ;;  %v7477_v42 = vld [vmem:[#allocation6 + $0xf8] sm:$0xff]  }
 0x136   : > { %6752 = vmatprep.subr.bf16.mxu0 %v7443_v47 }
 0x137   : > { %6453 = vmatmul.mubr.bf16.gmra.mrb[32].mxu1 %v1126_v49  ;;  %v1694_v49 = vsel %vm1673_vm1, %v1691_v33, %v1693_v43  ;;  %v7480_v33 = vld [vmem:[%s8014_s29 + $0x70] sm:$0xff]  }
 0x138   : > { %6713 = vmatmul.mubr.bf16.gmra.mrb[12].mxu0 %v7418_v45  ;;  %6456 = vmatprep.mubr.bf16.mxu1 %v1128_v51  ;;  %v7453_v45 = vld [vmem:[%s8014_s29 + $0xc0] sm:$0xff]   ;;  %v1696_v51 = vsel %vm1673_vm1, %v1693_v43, %v1695_v44  ;;  %v4516_v38 = vrot.slane %v7480_v33, 1  ;;  %v7509_v33 = vld [vmem:[%s8014_s29 + $0x30] sm:$0xff]  }
 0x139   : > { %6716 = vmatprep.mubr.bf16.mxu0 %v7422_v48  ;;  %6753 = vmatpush3.bf16.msra.mxu0 %v7443_v47  ;;  %v4500_v47 = vrot.slane %v7456_v41, 1  ;;  %v7457_v48 = vld [vmem:[%s8014_s29 + $0x60] sm:$0xff]  }
 0x13a   : > { %6754 = vmatprep.subr.bf16.mxu0 %v7449_v53  ;;  %v1697_v56 = vrot.slane %v7457_v48, 2 }
 0x13c   : > { %v1698_v0 = vsel %vm1673_vm1, %v1695_v44, %v1697_v56  ;;  %v7482_v44 = vld [vmem:[%s8014_s29 + $0x78] sm:$0xff]  }
 0x13d   : > { %6755 = vmatpush3.bf16.msra.mxu0 %v7449_v53  ;;  %v4501_v53 = vsel %vm1089_vm0, %v4499_v46, %v4500_v47  ;;  %v7484_v46 = vld [vmem:[%s8014_s29 + $0x80] sm:$0xff]  }
 0x13e   : > { %6796 = vmatprep.subr.bf16.mxu0 %v8177_v57 }
 0x13f   : > { %6457 = vmatmul.mubr.bf16.gmra.mrb[36].mxu1 %v1130_v59  ;;  %v1699_v59 = vrot.slane %v7461_v52, 2  ;;  %v7483_v52 = vld [vmem:[%s8014_s29 + $0x14] sm:$0xff]  }
 0x140   : > { %6717 = vmatmul.mubr.bf16.gmra.mrb[16].mxu0 %v7424_v58  ;;  %6476 = vmatprep.mubr.bf16.mxu1 %v1676_v61  ;;  %v4502_v58 = vrot.slane %v7459_v50, 1  ;;  %v7463_v61 = vld [vmem:[%s8014_s29 + $0x70] sm:$0xff]   ;;  %v4520_v50 = vrot.slane %v7484_v46, 1 }
 0x141   : > { %6720 = vmatprep.mubr.bf16.mxu0 %v7427_v62  ;;  %v7464_v62 = vld [vmem:[%s8014_s29 + $0x48] sm:$0xff]   ;;  %v1701_v9 = vrot.slane %v7463_v61, 2  ;;  %v7485_v61 = vld [vmem:[%s8014_s29 + $0x1c] sm:$0xff]  }
 0x142   : > { %v4503_v2 = vsel %vm1089_vm0, %v4500_v47, %v4502_v58  ;;  %v7502_v47 = vld [vmem:[#allocation6 + $0x238] sm:$0xff]  }
 0x143   : > { %v7510_v46 = vld [vmem:[%s8014_s29 + $0x6c] sm:$0xff]  }
 0x147   : > { %6477 = vmatmul.mubr.bf16.vlgmr.msra.gmra.mrb[0].mxu1 %v1678_v4  ;;  %v7467_v4 = vld [vmem:[%s8014_s29 + $0x78] sm:$0xff]  }
 0x148   : > { %6721 = vmatmul.mubr.bf16.gmra.mrb[20].mxu0 %v7430_v3  ;;  %6517 = vmatpush3.bf16.msra.mxu1 %v8142_v7  ;;  %v7448_v7 = vld [vmem:[#allocation6 + $0xd8] sm:$0xff]   ;;  %v1700_v3 = vsel %vm1673_vm1, %v1697_v56, %v1699_v59 }
 0x149   : > { %6480 = vmatprep.mubr.bf16.mxu1 %v1680_v10  ;;  %6724 = vmatprep.mubr.bf16.mxu0 %v7433_v5  ;;  %v4505_v5 = vsel %vm1089_vm0, %v4502_v58, %v4504_v60  ;;  %v4506_v10 = vrot.slane %v7464_v62, 1  ;;  %v7489_v58 = vld [vmem:[%s8014_s29 + $0x90] sm:$0xff]  }
 0x14a   : > { %6518 = vmatprep.subr.bf16.mxu1 %v7436_v11 }
 0x14b   : > { %v4507_v18 = vsel %vm1089_vm0, %v4504_v60, %v4506_v10  ;;  %v4524_v60 = vrot.slane %v7489_v58, 1 }
 0x14c   : > { %6519 = vmatpush3.bf16.msra.mxu1 %v7436_v11  ;;  %v1703_v11 = vrot.slane %v7467_v4, 2 }
 0x14d   : > { %6520 = vmatprep.subr.bf16.mxu1 %v7442_v14 }
 0x14f   : > { %6481 = vmatmul.mubr.bf16.gmra.mrb[4].mxu1 %v1682_v17  ;;  %v7473_v17 = vld [vmem:[%s8014_s29 + $0x88] sm:$0xff]  }
 0x150   : > { %6725 = vmatmul.mubr.bf16.gmra.mrb[24].mxu0 %v7435_v15  ;;  %6484 = vmatprep.mubr.bf16.mxu1 %v1684_v19  ;;  %v7470_v15 = vld [vmem:[%s8014_s29 + $0x58] sm:$0xff]   ;;  %v1704_v19 = vsel %vm1673_vm1, %v1701_v9, %v1703_v11 }
 0x151   : > { %6728 = vmatprep.mubr.bf16.mxu0 %v7439_v16  ;;  %6521 = vmatpush3.bf16.msra.mxu1 %v7442_v14  ;;  %v7472_v14 = vld [vmem:[#allocation6 + $0x210] sm:$0xff]   ;;  %v1702_v16 = vsel %vm1673_vm1, %v1699_v59, %v1701_v9  ;;  %v4510_v22 = vrot.slane %v7470_v15, 1  ;;  %v4522_v59 = vrot.slane %v7486_v54, 1 }
 0x152   : > { %6522 = vmatprep.subr.bf16.mxu1 %v7448_v7  ;;  %v7490_v9 = vld [vmem:[%s8014_s29 + $0x2c] sm:$0xff]   ;;  %v7514_v54 = vld [vmem:[%s8014_s29 + $0x7c] sm:$0xff]  }
 0x153   : > { %v4523_v62 = vsel %vm1089_vm0, %v4520_v50, %v4522_v59 }
 0x155   : > { %6523 = vmatpush3.bf16.msra.mxu1 %v7448_v7  ;;  %v7478_v7 = vld [vmem:[#allocation6 + $0x218] sm:$0xff]  }
 0x156   : > { %6524 = vmatprep.subr.bf16.mxu1 %v7458_v25 }
 0x157   : > { %6485 = vmatmul.mubr.bf16.gmra.mrb[8].mxu1 %v1686_v27  ;;  %v7487_v27 = vld [vmem:[#allocation6 + $0x220] sm:$0xff]  }
 0x158   : > { %6729 = vmatmul.mubr.bf16.gmra.mrb[28].mxu0 %v7441_v23  ;;  %6488 = vmatprep.mubr.bf16.mxu1 %v1688_v29  ;;  %v1707_v23 = vrot.slane %v7473_v17, 2  ;;  %v1706_v29 = vsel %vm1673_vm1, %v1703_v11, %v1705_v21  ;;  %v7551_v17 = vld [vmem:[#allocation6 + $0x118] sm:$0xff]  }
 0x159   : > { %6732 = vmatprep.mubr.bf16.mxu0 %v7445_v26  ;;  %6525 = vmatpush3.bf16.msra.mxu1 %v7458_v25  ;;  %v4512_v25 = vrot.slane %v7474_v20, 1  ;;  %v7475_v26 = vld [vmem:[%s8014_s29 + $0x90] sm:$0xff]  }
 0x15a   : > { %6526 = vmatprep.subr.bf16.mxu1 %v7465_v31  ;;  %v1708_v32 = vsel %vm1673_vm1, %v1705_v21, %v1707_v23  ;;  %v7504_v21 = vld [vmem:[%s8014_s29 + $0xc0] sm:$0xff]  }
 0x15d   : > { %6527 = vmatpush3.bf16.msra.mxu1 %v7465_v31  ;;  %v4511_v31 = vsel %vm1089_vm0, %v4508_v12, %v4510_v22 }
 0x15e   : > { %6528 = vmatprep.subr.bf16.mxu1 %v7471_v34 }
 0x15f   : > { %6489 = vmatmul.mubr.bf16.gmra.mrb[12].mxu1 %v1690_v37  ;;  %v1711_v37 = vrot.slane %v7479_v30, 2  ;;  %v7506_v30 = vld [vmem:[%s8014_s29 + $0xc8] ss:$0 sps:$4 sm:$0x11]  }
 0x160   : > { %6733 = vmatmul.mubr.bf16.gmra.mrb[32].mxu0 %v7447_v24  ;;  %6492 = vmatprep.mubr.bf16.mxu1 %v1692_v39  ;;  %v4513_v24 = vsel %vm1089_vm0, %v4510_v22, %v4512_v25  ;;  %v7481_v39 = vld [vmem:[%s8014_s29 + $0xa0] ss:$0 sps:$4 sm:$0x33]   ;;  %v7552_v22 = vld [vmem:[#allocation6 + $0x120] sm:$0xff]  }
 0x161   : > { %6736 = vmatprep.mubr.bf16.mxu0 %v7451_v35  ;;  %6529 = vmatpush3.bf16.msra.mxu1 %v7471_v34  ;;  %v7492_v34 = vld [vmem:[#allocation6 + $0x228] sm:$0xff]   ;;  %v1709_v35 = vrot.slane %v7475_v26, 2  ;;  %v1713_v48 = vrot.slane %v7481_v39, 2 }
 0x162   : > { %6530 = vmatprep.subr.bf16.mxu1 %v7477_v42  ;;  %v7553_v26 = vld [vmem:[#allocation6 + $0x128] sm:$0xff]  }
 0x163   : > { %v1710_v41 = vsel %vm1673_vm1, %v1707_v23, %v1709_v35  ;;  %v1712_v43 = vsel %vm1673_vm1, %v1709_v35, %v1711_v37  ;;  %v7507_v39 = vld [vmem:[%s8014_s29 + $0x64] sm:$0xff]  }
 0x165   : > { %6531 = vmatpush3.bf16.msra.mxu1 %v7477_v42  ;;  %v4515_v42 = vsel %vm1089_vm0, %v4512_v25, %v4514_v36  ;;  %v4536_v25 = vrot.slane %v7504_v21, 1 }
 0x166   : > { %6852 = vmatprep.subr.bf16.mxu1 %v8221_v55 }
 0x167   : > { %6493 = vmatmul.mubr.bf16.gmra.mrb[16].mxu1 %v1694_v49  ;;  %v4518_v49 = vrot.slane %v7482_v44, 1 }
 0x168   : > { %6737 = vmatmul.mubr.bf16.gmra.mrb[36].mxu0 %v7453_v45  ;;  %6496 = vmatprep.mubr.bf16.mxu1 %v1696_v51  ;;  %v4517_v45 = vsel %vm1089_vm0, %v4514_v36, %v4516_v38  ;;  %v1714_v51 = vsel %vm1673_vm1, %v1711_v37, %v1713_v48  ;;  %v5083_v36 = vrot.slane %v7509_v33, 2  ;;  %v7555_v37 = vld [vmem:[#allocation6 + $0x138] sm:$0xff]   ;;  %v7535_v33 = vld [vmem:[%s8014_s29 + $0x98] sm:$0xff]  }
 0x169   : > { %6756 = vmatprep.mubr.bf16.mxu0 %v4501_v53  ;;  %v4519_v53 = vsel %vm1089_vm0, %v4516_v38, %v4518_v49  ;;  %v4521_v56 = vsel %vm1089_vm0, %v4518_v49, %v4520_v50  ;;  %v7505_v38 = vld [vmem:[%s8014_s29 + $0x5c] sm:$0xff]   ;;  %v7515_v49 = vld [vmem:[%s8014_s29 + $0x48] sm:$0xff]  }
 0x16f   : > { %6497 = vmatmul.mubr.bf16.gmra.mrb[20].mxu1 %v1698_v0  ;;  %v7488_v0 = vld [vmem:[%s8014_s29 + $0x24] sm:$0xff]  }
 0x170   : > { %6757 = vmatmul.mubr.bf16.vlgmr.msra.gmra.mrb[0].mxu0 %v4503_v2  ;;  %6500 = vmatprep.mubr.bf16.mxu1 %v1700_v3  ;;  %v4525_v2 = vsel %vm1089_vm0, %v4522_v59, %v4524_v60  ;;  %v7494_v3 = vld [vmem:[%s8014_s29 + $0xa0] sm:$0xff]   ;;  %v7519_v59 = vld [vmem:[%s8014_s29 + $0x58] sm:$0xff]  }
 0x171   : > { %6797 = vmatpush3.bf16.msra.mxu0 %v8177_v57  ;;  %6760 = vmatprep.mubr.bf16.mxu0 %v4505_v5  ;;  %v4509_v57 = vsel %vm1089_vm0, %v4506_v10, %v4508_v12  ;;  %v7549_v5 = vld [vmem:[#allocation6 + $0x108] sm:$0xff]   ;;  %v4528_v8 = vrot.slane %v7494_v3, 1  ;;  %v7496_v12 = vld [vmem:[%s8014_s29 + $0xa8] sm:$0xff]  }
 0x172   : > { %6798 = vmatprep.subr.bf16.mxu0 %v7466_v1  ;;  %v7493_v10 = vld [vmem:[%s8014_s29 + $0x34] sm:$0xff]   ;;  %v4530_v15 = vrot.slane %v7496_v12, 1  ;;  %v7524_v12 = vld [vmem:[%s8014_s29 + $0xa4] sm:$0xff]  }
 0x174   : > { %v4531_v20 = vsel %vm1089_vm0, %v4528_v8, %v4530_v15 }
 0x175   : > { %6799 = vmatpush3.bf16.msra.mxu0 %v7466_v1  ;;  %v7491_v1 = vld [vmem:[%s8014_s29 + $0x98] sm:$0xff]  }
 0x176   : > { %6800 = vmatprep.subr.bf16.mxu0 %v7472_v14  ;;  %v4526_v4 = vrot.slane %v7491_v1, 1  ;;  %v7518_v1 = vld [vmem:[%s8014_s29 + $0x8c] sm:$0xff]  }
 0x177   : > { %6501 = vmatmul.mubr.bf16.gmra.mrb[24].mxu1 %v1702_v16 }
 0x178   : > { %6761 = vmatmul.mubr.bf16.gmra.mrb[4].mxu0 %v4507_v18  ;;  %6504 = vmatprep.mubr.bf16.mxu1 %v1704_v19  ;;  %v4527_v11 = vsel %vm1089_vm0, %v4524_v60, %v4526_v4  ;;  %v7495_v18 = vld [vmem:[%s8014_s29 + $0x3c] sm:$0xff]   ;;  %v7498_v19 = vld [vmem:[%s8014_s29 + $0x44] sm:$0xff]  }
 0x179   : > { %6764 = vmatprep.mubr.bf16.mxu0 %v4509_v57  ;;  %6801 = vmatpush3.bf16.msra.mxu0 %v7472_v14  ;;  %v4529_v14 = vsel %vm1089_vm0, %v4526_v4, %v4528_v8  ;;  %v7501_v57 = vld [vmem:[%s8014_s29 + $0xb8] sm:$0xff]   ;;  %v7523_v4 = vld [vmem:[%s8014_s29 + $0x68] sm:$0xff]   ;;  %v7525_v8 = vld [vmem:[%s8014_s29 + $0x70] sm:$0xff]  }
 0x17a   : > { %6802 = vmatprep.subr.bf16.mxu0 %v7478_v7  ;;  %v4534_v23 = vrot.slane %v7501_v57, 1  ;;  %v7530_v57 = vld [vmem:[%s8014_s29 + $0x74] sm:$0xff]  }
 0x17d   : > { %6803 = vmatpush3.bf16.msra.mxu0 %v7478_v7 }
 0x17e   : > { %6804 = vmatprep.subr.bf16.mxu0 %v7487_v27 }
 0x17f   : > { %6505 = vmatmul.mubr.bf16.gmra.mrb[28].mxu1 %v1706_v29 }
 0x180   : > { %6765 = vmatmul.mubr.bf16.gmra.mrb[8].mxu0 %v4511_v31  ;;  %6508 = vmatprep.mubr.bf16.mxu1 %v1708_v32  ;;  %v4537_v31 = vsel %vm1089_vm0, %v4534_v23, %v4536_v25  ;;  %v7508_v32 = vld [vmem:[%s8014_s29 + $0x28] sm:$0xfc]  }
 0x181   : > { %6768 = vmatprep.mubr.bf16.mxu0 %v4513_v24  ;;  %6805 = vmatpush3.bf16.msra.mxu0 %v7487_v27  ;;  %v7500_v27 = vld [vmem:[%s8014_s29 + $0x4c] sm:$0xff]   ;;  %v5082_v35 = vrot.slane %v7508_v32, 2 }
 0x182   : > { %6806 = vmatprep.subr.bf16.mxu0 %v7492_v34  ;;  %v7554_v24 = vld [vmem:[#allocation6 + $0x130] sm:$0xff]  }
 0x185   : > { %6807 = vmatpush3.bf16.msra.mxu0 %v7492_v34  ;;  %v4538_v34 = vrot.slane %v7506_v30, 1 }
 0x186   : > { %6808 = vmatprep.subr.bf16.mxu0 %v7497_v40 }
 0x187   : > { %6509 = vmatmul.mubr.bf16.gmra.mrb[32].mxu1 %v1710_v41  ;;  %v7511_v41 = vld [vmem:[%s8014_s29 + $0x38] sm:$0xff]  }
 0x188   : > { %6769 = vmatmul.mubr.bf16.gmra.mrb[12].mxu0 %v4515_v42  ;;  %6512 = vmatprep.mubr.bf16.mxu1 %v1712_v43  ;;  %v5084_v42 = vsel %vm1673_vm1, %v5082_v35, %v5083_v36  ;;  %v7513_v43 = vld [vmem:[%s8014_s29 + $0x40] sm:$0xff]   ;;  %v5085_v44 = vrot.slane %v7511_v41, 2  ;;  %v7538_v41 = vld [vmem:[%s8014_s29 + $0x94] sm:$0xff]  }
 0x189   : > { %6772 = vmatprep.mubr.bf16.mxu0 %v4517_v45  ;;  %6809 = vmatpush3.bf16.msra.mxu0 %v7497_v40  ;;  %v4539_v40 = vsel %vm1089_vm0, %v4536_v25, %v4538_v34  ;;  %v5087_v45 = vrot.slane %v7513_v43, 2  ;;  %v7537_v35 = vld [vmem:[%s8014_s29 + $0xa0] sm:$0xff]  }
 0x18a   : > { %6810 = vmatprep.subr.bf16.mxu0 %v7502_v47  ;;  %v5086_v48 = vsel %vm1673_vm1, %v5083_v36, %v5085_v44 }
 0x18b   : > { %v5088_v50 = vsel %vm1673_vm1, %v5085_v44, %v5087_v45  ;;  %v7539_v44 = vld [vmem:[%s8014_s29 + $0xa8] sm:$0xff]  }
 0x18d   : > { %6811 = vmatpush3.bf16.msra.mxu0 %v7502_v47  ;;  %v7512_v47 = vld [vmem:[%s8014_s29 + $0x74] sm:$0xff]  }
 0x18f   : > { %6513 = vmatmul.mubr.bf16.gmra.mrb[36].mxu1 %v1714_v51  ;;  %v7517_v51 = vld [vmem:[%s8014_s29 + $0x50] sm:$0xff]  }
 0x190   : > { %6773 = vmatmul.mubr.bf16.gmra.mrb[16].mxu0 %v4519_v53  ;;  %6532 = vmatprep.mubr.bf16.mxu1 %v7483_v52  ;;  %v5089_v52 = vrot.slane %v7515_v49, 2  ;;  %v5091_v53 = vrot.slane %v7517_v51, 2  ;;  %v5113_v49 = vrot.slane %v7539_v44, 2 }
 0x191   : > { %6776 = vmatprep.mubr.bf16.mxu0 %v4521_v56  ;;  %v7516_v56 = vld [vmem:[%s8014_s29 + $0x84] sm:$0xff]  }
 0x192   : > { %v5090_v58 = vsel %vm1673_vm1, %v5087_v45, %v5089_v52  ;;  %v5092_v60 = vsel %vm1673_vm1, %v5089_v52, %v5091_v53  ;;  %v7540_v45 = vld [vmem:[%s8014_s29 + $0x9c] sm:$0xff]  }
 0x197   : > { %6533 = vmatmul.mubr.bf16.vlgmr.msra.gmra.mrb[0].mxu1 %v7485_v61  ;;  %v7521_v61 = vld [vmem:[%s8014_s29 + $0x60] sm:$0xff]  }
 0x198   : > { %6777 = vmatmul.mubr.bf16.gmra.mrb[20].mxu0 %v4523_v62  ;;  %6860 = vmatpush3.bf16.msra.mxu1 %v8221_v55  ;;  %v7499_v55 = vld [vmem:[%s8014_s29 + $0xb0] sm:$0xff]   ;;  %v5093_v62 = vrot.slane %v7519_v59, 2 }
 0x199   : > { %6536 = vmatprep.mubr.bf16.mxu1 %v7488_v0  ;;  %6780 = vmatprep.mubr.bf16.mxu0 %v4525_v2  ;;  %v4532_v16 = vrot.slane %v7499_v55, 1  ;;  %v5095_v0 = vrot.slane %v7521_v61, 2  ;;  %v7520_v2 = vld [vmem:[%s8014_s29 + $0x94] sm:$0xff]   ;;  %v7528_v55 = vld [vmem:[%s8014_s29 + $0x6c] sm:$0xff]   ;;  %v7545_v61 = vld [vmem:[%s8014_s29 + $0xc0] sm:$0xff]  }
 0x19a   : > { %6853 = vmatprep.subr.bf16.mxu1 %v7549_v5  ;;  %v5094_v3 = vsel %vm1673_vm1, %v5091_v53, %v5093_v62  ;;  %v7542_v53 = vld [vmem:[%s8014_s29 + $0xa4] sm:$0xff]   ;;  %v7544_v59 = vld [vmem:[%s8014_s29 + $0xac] sm:$0xff]  }
 0x19b   : > { %v4533_v7 = vsel %vm1089_vm0, %v4530_v15, %v4532_v16  ;;  %v4535_v29 = vsel %vm1089_vm0, %v4532_v16, %v4534_v23  ;;  %v7529_v16 = vld [vmem:[%s8014_s29 + $0x80] sm:$0xff]  }
 0x19c   : > { %6861 = vmatpush3.bf16.msra.mxu1 %v7549_v5  ;;  %v5096_v5 = vsel %vm1673_vm1, %v5093_v62, %v5095_v0  ;;  %v7532_v23 = vld [vmem:[%s8014_s29 + $0x7c] sm:$0xff]   ;;  %v2830_v62 = vrot.slane %v7542_v53, 1 }
 0x19d   : > { %6854 = vmatprep.subr.bf16.mxu1 %v7550_v13 }
 0x19f   : > { %6537 = vmatmul.mubr.bf16.gmra.mrb[4].mxu1 %v7490_v9  ;;  %v5097_v9 = vrot.slane %v7523_v4, 2  ;;  %v7546_v4 = vld [vmem:[%s8014_s29 + $0xb4] ss:$0 sps:$4 sm:$0x11]  }
 0x1a0   : > { %6781 = vmatmul.mubr.bf16.gmra.mrb[24].mxu0 %v4527_v11  ;;  %6540 = vmatprep.mubr.bf16.mxu1 %v7493_v10  ;;  %v5099_v10 = vrot.slane %v7525_v8, 2  ;;  %v7522_v11 = vld [vmem:[%s8014_s29 + $0x9c] sm:$0xff]  }
 0x1a1   : > { %6784 = vmatprep.mubr.bf16.mxu0 %v4529_v14  ;;  %6862 = vmatpush3.bf16.msra.mxu1 %v7550_v13  ;;  %v5098_v13 = vsel %vm1673_vm1, %v5095_v0, %v5097_v9  ;;  %v7527_v14 = vld [vmem:[%s8014_s29 + $0x78] sm:$0xff]  }
 0x1a2   : > { %6855 = vmatprep.subr.bf16.mxu1 %v7551_v17  ;;  %v5100_v15 = vsel %vm1673_vm1, %v5097_v9, %v5099_v10  ;;  %v7547_v9 = vld [vmem:[%s8014_s29 + $0xc8] ss:$0 sps:$4 sm:$0x33]  }
 0x1a5   : > { %6863 = vmatpush3.bf16.msra.mxu1 %v7551_v17  ;;  %v5101_v17 = vrot.slane %v7527_v14, 2 }
 0x1a6   : > { %6856 = vmatprep.subr.bf16.mxu1 %v7552_v22 }
 0x1a7   : > { %6541 = vmatmul.mubr.bf16.gmra.mrb[8].mxu1 %v7495_v18  ;;  %v2816_v18 = vrot.slane %v7528_v55, 1 }
 0x1a8   : > { %6785 = vmatmul.mubr.bf16.gmra.mrb[28].mxu0 %v4531_v20  ;;  %6544 = vmatprep.mubr.bf16.mxu1 %v7498_v19  ;;  %v5103_v19 = vrot.slane %v7529_v16, 2  ;;  %v7526_v20 = vld [vmem:[%s8014_s29 + $0xac] sm:$0xff]  }
 0x1a9   : > { %6788 = vmatprep.mubr.bf16.mxu0 %v4533_v7  ;;  %6864 = vmatpush3.bf16.msra.mxu1 %v7552_v22  ;;  %v5102_v7 = vsel %vm1673_vm1, %v5099_v10, %v5101_v17  ;;  %v2817_v21 = vsel %vm1089_vm0, %v2814_v6, %v2816_v18  ;;  %v7531_v22 = vld [vmem:[%s8014_s29 + $0x88] sm:$0xff]  }
 0x1aa   : > { %6857 = vmatprep.subr.bf16.mxu1 %v7553_v26  ;;  %v5104_v25 = vsel %vm1673_vm1, %v5101_v17, %v5103_v19 }
 0x1ad   : > { %6865 = vmatpush3.bf16.msra.mxu1 %v7553_v26  ;;  %v7533_v26 = vld [vmem:[%s8014_s29 + $0x90] sm:$0xff]  }
 0x1ae   : > { %6858 = vmatprep.subr.bf16.mxu1 %v7554_v24  ;;  %v5107_v30 = vrot.slane %v7533_v26, 2 }
 0x1af   : > { %6545 = vmatmul.mubr.bf16.gmra.mrb[12].mxu1 %v7500_v27  ;;  %v2818_v27 = vrot.slane %v7530_v57, 1 }
 0x1b0   : > { %6789 = vmatmul.mubr.bf16.gmra.mrb[32].mxu0 %v4535_v29  ;;  %6548 = vmatprep.mubr.bf16.mxu1 %v7503_v28  ;;  %v5105_v28 = vrot.slane %v7531_v22, 2  ;;  %v2820_v29 = vrot.slane %v7532_v23, 1 }
 0x1b1   : > { %6792 = vmatprep.mubr.bf16.mxu0 %v4537_v31  ;;  %6866 = vmatpush3.bf16.msra.mxu1 %v7554_v24  ;;  %v2819_v63 = vsel %vm1089_vm0, %v2816_v18, %v2818_v27  ;;  %v7534_v31 = vld [vmem:[%s8014_s29 + $0x84] sm:$0xff]   ;;  %v7536_v24 = vld [vmem:[%s8014_s29 + $0x8c] sm:$0xff]  }
 0x1b2   : > { %6859 = vmatprep.subr.bf16.mxu1 %v7555_v37  ;;  %v5106_v6 = vsel %vm1673_vm1, %v5103_v19, %v5105_v28  ;;  %v2821_v32 = vsel %vm1089_vm0, %v2818_v27, %v2820_v29  ;;  %v5108_v34 = vsel %vm1673_vm1, %v5105_v28, %v5107_v30  ;;  %v2822_v36 = vrot.slane %v7534_v31, 1 }
 0x1b5   : > { %6867 = vmatpush3.bf16.msra.mxu1 %v7555_v37  ;;  %v5109_v37 = vrot.slane %v7535_v33, 2 }
 0x1b7   : > { %6549 = vmatmul.mubr.bf16.gmra.mrb[16].mxu1 %v7505_v38  ;;  %v2824_v38 = vrot.slane %v7536_v24, 1 }
 0x1b8   : > { %6793 = vmatmul.mubr.bf16.gmra.mrb[36].mxu0 %v4539_v40  ;;  %6552 = vmatprep.mubr.bf16.mxu1 %v7507_v39  ;;  %v5111_v39 = vrot.slane %v7537_v35, 2  ;;  %v2823_v40 = vsel %vm1089_vm0, %v2820_v29, %v2822_v36 }
 0x1b9   : > { %6812 = vmatprep.mubr.bf16.mxu0 %v5084_v42  ;;  %v5110_v42 = vsel %vm1673_vm1, %v5107_v30, %v5109_v37  ;;  %v2825_v43 = vsel %vm1089_vm0, %v2822_v36, %v2824_v38 }
 0x1bf   : > { %6553 = vmatmul.mubr.bf16.gmra.mrb[20].mxu1 %v7510_v46  ;;  %v5112_v46 = vsel %vm1673_vm1, %v5109_v37, %v5111_v39 }
 0x1c0   : > { %6813 = vmatmul.mubr.bf16.vlgmr.msra.gmra.mrb[0].mxu0 %v5086_v48  ;;  %6556 = vmatprep.mubr.bf16.mxu1 %v7512_v47  ;;  %v7541_v47 = vld [vmem:[%s8014_s29 + $0xb0] sm:$0xff]   ;;  %v2826_v48 = vrot.slane %v7538_v41, 1 }
 0x1c1   : > { %6816 = vmatprep.mubr.bf16.mxu0 %v5088_v50  ;;  %v2828_v50 = vrot.slane %v7540_v45, 1  ;;  %v5115_v51 = vrot.slane %v7541_v47, 2 }
 0x1c2   : > { %v2827_v52 = vsel %vm1089_vm0, %v2824_v38, %v2826_v48 }
 0x1c7   : > { %6557 = vmatmul.mubr.bf16.gmra.mrb[24].mxu1 %v7514_v54  ;;  %v5114_v54 = vsel %vm1673_vm1, %v5111_v39, %v5113_v49 }
 0x1c8   : > { %6817 = vmatmul.mubr.bf16.gmra.mrb[4].mxu0 %v5090_v58  ;;  %6560 = vmatprep.mubr.bf16.mxu1 %v7516_v56  ;;  %v2829_v56 = vsel %vm1089_vm0, %v2826_v48, %v2828_v50  ;;  %v7543_v58 = vld [vmem:[%s8014_s29 + $0xb8] sm:$0xff]  }
 0x1c9   : > { %6820 = vmatprep.mubr.bf16.mxu0 %v5092_v60  ;;  %v5116_v60 = vsel %vm1673_vm1, %v5113_v49, %v5115_v51  ;;  %v5117_v0 = vrot.slane %v7543_v58, 2 }
 0x1cf   : > { %6561 = vmatmul.mubr.bf16.gmra.mrb[28].mxu1 %v7518_v1  ;;  %v2832_v1 = vrot.slane %v7544_v59, 1 }
 0x1d0   : > { %6821 = vmatmul.mubr.bf16.gmra.mrb[8].mxu0 %v5094_v3  ;;  %6564 = vmatprep.mubr.bf16.mxu1 %v7520_v2  ;;  %v5119_v2 = vrot.slane %v7545_v61, 2  ;;  %v2831_v3 = vsel %vm1089_vm0, %v2828_v50, %v2830_v62 }
 0x1d1   : > { %6824 = vmatprep.mubr.bf16.mxu0 %v5096_v5  ;;  %v5118_v5 = vsel %vm1673_vm1, %v5115_v51, %v5117_v0  ;;  %v2833_v8 = vsel %vm1089_vm0, %v2830_v62, %v2832_v1 }
 0x1d2   : > { %v5120_v10 = vsel %vm1673_vm1, %v5117_v0, %v5119_v2 }
 0x1d7   : > { %6565 = vmatmul.mubr.bf16.gmra.mrb[32].mxu1 %v7522_v11  ;;  %v2834_v11 = vrot.slane %v7546_v4, 1 }
 0x1d8   : > { %6825 = vmatmul.mubr.bf16.gmra.mrb[12].mxu0 %v5098_v13  ;;  %6568 = vmatprep.mubr.bf16.mxu1 %v7524_v12  ;;  %v5121_v12 = vrot.slane %v7547_v9, 2 }
 0x1d9   : > { %6828 = vmatprep.mubr.bf16.mxu0 %v5100_v15  ;;  %v2835_v13 = vsel %vm1089_vm0, %v2832_v1, %v2834_v11 }
 0x1da   : > { %v5122_v14 = vsel %vm1673_vm1, %v5119_v2, %v5121_v12 }
 0x1df   : > { %6569 = vmatmul.mubr.bf16.gmra.mrb[36].mxu1 %v7526_v20 }
 0x1e0   : > { %6829 = vmatmul.mubr.bf16.gmra.mrb[16].mxu0 %v5102_v7  ;;  %6608 = vmatprep.mubr.bf16.mxu1 %v2817_v21 }
 0x1e1   : > { %6832 = vmatprep.mubr.bf16.mxu0 %v5104_v25 }
 0x1e7   : > { %6609 = vmatmul.mubr.bf16.vlgmr.msra.gmra.mrb[20].mxu1 %v2819_v63 }
 0x1e8   : > { %6833 = vmatmul.mubr.bf16.gmra.mrb[20].mxu0 %v5106_v6  ;;  %6612 = vmatprep.mubr.bf16.mxu1 %v2821_v32  ;;  %v8383_v32 = vld [vmem:[#allocation8] ss:$0 sm:$0xff] }
 0x1e9   : > { %6836 = vmatprep.mubr.bf16.mxu0 %v5108_v34  ;;  %v8386_v34 = vld [vmem:[#allocation9] ss:$0 sm:$0xff] }
 0x1ef   : > { %6613 = vmatmul.mubr.bf16.gmra.mrb[24].mxu1 %v2823_v40 }
 0x1f0   : > { %6837 = vmatmul.mubr.bf16.gmra.mrb[24].mxu0 %v5110_v42  ;;  %6616 = vmatprep.mubr.bf16.mxu1 %v2825_v43 }
 0x1f1   : > { %6840 = vmatprep.mubr.bf16.mxu0 %v5112_v46 }
 0x1f7   : > { %6617 = vmatmul.mubr.bf16.gmra.mrb[28].mxu1 %v2827_v52 }
 0x1f8   : > { %6841 = vmatmul.mubr.bf16.gmra.mrb[28].mxu0 %v5114_v54  ;;  %6620 = vmatprep.mubr.bf16.mxu1 %v2829_v56 }
 0x1f9   : > { %6844 = vmatprep.mubr.bf16.mxu0 %v5116_v60 }
 0x1ff   : > { %6621 = vmatmul.mubr.bf16.gmra.mrb[32].mxu1 %v2831_v3 }
 0x200   : > { %6845 = vmatmul.mubr.bf16.gmra.mrb[32].mxu0 %v5118_v5  ;;  %6624 = vmatprep.mubr.bf16.mxu1 %v2833_v8 }
 0x201   : > { %6848 = vmatprep.mubr.bf16.mxu0 %v5120_v10 }
 0x207   : > { %6625 = vmatmul.mubr.bf16.gmra.mrb[36].mxu1 %v2835_v13 }
 0x208   : > { %6849 = vmatmul.mubr.bf16.gmra.mrb[36].mxu0 %v5122_v14 }
 0x26a   : > { %v6534_v55 = vpop.f32.mrb[0].mxu1 }
 0x26b   : > { %v2355_v15 = vpop.f32.mrb[1].mxu1 }
 0x26c   : > { %v6535_v16 = vpop.f32.mrb[2].mxu1 }
 0x26d   : > { %v2358_v17 = vpop.f32.mrb[3].mxu1 }
 0x272   : > { %v6538_v18 = vpop.f32.mrb[4].mxu1 }
 0x273   : > { %v2371_v19 = vpop.f32.mrb[5].mxu1 }
 0x274   : > { %v6539_v20 = vpop.f32.mrb[6].mxu1 }
 0x275   : > { %v2374_v57 = vpop.f32.mrb[7].mxu1 }
 0x27a   : > { %v6542_v7 = vpop.f32.mrb[8].mxu1 }
 0x27b   : > { %v8361_v21 = vpop.f32.mrb[9].mxu1 }
 0x27c   : > { %v8363_v22 = vpop.f32.mrb[10].mxu1 }
 0x27d   : > { %v8365_v23 = vpop.f32.mrb[11].mxu1 }
 0x282   : > { %v8367_v25 = vpop.f32.mrb[12].mxu1 }
 0x283   : > { %v8369_v26 = vpop.f32.mrb[13].mxu1 }
 0x284   : > { %v8371_v27 = vpop.f32.mrb[14].mxu1 }
 0x285   : > { %v8373_v28 = vpop.f32.mrb[15].mxu1 }
 0x28a   : > { %v8375_v29 = vpop.f32.mrb[16].mxu1 }
 0x28b   : > { %v8377_v30 = vpop.f32.mrb[17].mxu1 }
 0x28c   : > { %v8379_v63 = vpop.f32.mrb[18].mxu1 }
 0x28d   : > { %v8381_v31 = vpop.f32.mrb[19].mxu1 }
 0x293   : > { %v6814_v6 = vpop.f32.mrb[0].mxu0 }
 0x294   : > { %v6868_v33 = vadd.f32 %v6814_v6, %v6534_v55  ;;  %v5225_v24 = vpop.f32.mrb[1].mxu0 }
 0x295   : > { %v6869_v35 = vadd.f32 %v5225_v24, %v2355_v15  ;;  %v6815_v36 = vpop.f32.mrb[2].mxu0 }
 0x296   : > { %v5516_v37 = vmul.f32 %v6868_v33, %v8383_v32  ;;  %v6870_v38 = vadd.f32 %v6815_v36, %v6535_v16  ;;  %v5228_v39 = vpop.f32.mrb[3].mxu0 }
 0x297   : > { %v5514_v40 = vmul.f32 %v6869_v35, %v8383_v32  ;;  %v6871_v41 = vadd.f32 %v5228_v39, %v2358_v17 }
 0x298   : > { %v5563_v42 = vadd.f32 %v8386_v34, %v5516_v37  ;;  %v5517_v43 = vmul.f32 %v6870_v38, %v8383_v32 }
 0x299   : > { %v5561_v44 = vadd.f32 %v8386_v34, %v5514_v40  ;;  %v5515_v45 = vmul.f32 %v6871_v41, %v8383_v32 }
 0x29a   : > { %v5603_v46 = vmax.f32 %v5563_v42, 0.0  ;;  %v5564_v47 = vadd.f32 %v8386_v34, %v5517_v43 }
 0x29b   : > { %v5601_v48 = vmax.f32 %v5561_v44, 0.0  ;;  %v5562_v49 = vadd.f32 %v8386_v34, %v5515_v45  ;;  %v6818_v50 = vpop.f32.mrb[4].mxu0 }
 0x29c   : > { %5643 = vst [vmem:[%s8396_s25 + $0x10] sm:$0xff] %v5603_v46  ;;  %v5604_v51 = vmax.f32 %v5564_v47, 0.0  ;;  %v6872_v52 = vadd.f32 %v6818_v50, %v6538_v18  ;;  %v5241_v53 = vpop.f32.mrb[5].mxu0 }
 0x29d   : > { %5641 = vst [vmem:[%s8396_s25] sm:$0xff] %v5601_v48  ;;  %v5602_v54 = vmax.f32 %v5562_v49, 0.0  ;;  %v6873_v56 = vadd.f32 %v5241_v53, %v2371_v19  ;;  %v6819_v58 = vpop.f32.mrb[6].mxu0 }
 0x29e   : > { %5644 = vst [vmem:[%s8396_s25 + $0x18] sm:$0xff] %v5604_v51  ;;  %v5520_v59 = vmul.f32 %v6872_v52, %v8383_v32  ;;  %v6874_v60 = vadd.f32 %v6819_v58, %v6539_v20  ;;  %v5244_v61 = vpop.f32.mrb[7].mxu0 }
 0x29f   : > { %5642 = vst [vmem:[%s8396_s25 + $0x8] sm:$0xff] %v5602_v54  ;;  %v5518_v62 = vmul.f32 %v6873_v56, %v8383_v32  ;;  %v6875_v0 = vadd.f32 %v5244_v61, %v2374_v57 }
 0x2a0   : > { %v5567_v1 = vadd.f32 %v8386_v34, %v5520_v59  ;;  %v5521_v2 = vmul.f32 %v6874_v60, %v8383_v32 }
 0x2a1   : > { %v5565_v3 = vadd.f32 %v8386_v34, %v5518_v62  ;;  %v5519_v4 = vmul.f32 %v6875_v0, %v8383_v32 }
 0x2a2   : > { %v5607_v5 = vmax.f32 %v5567_v1, 0.0  ;;  %v5568_v8 = vadd.f32 %v8386_v34, %v5521_v2 }
 0x2a3   : > { %v5605_v9 = vmax.f32 %v5565_v3, 0.0  ;;  %v5566_v10 = vadd.f32 %v8386_v34, %v5519_v4  ;;  %v6822_v11 = vpop.f32.mrb[8].mxu0 }
 0x2a4   : > { %5647 = vst [vmem:[%s8396_s25 + $0x30] sm:$0xff] %v5607_v5  ;;  %v5608_v12 = vmax.f32 %v5568_v8, 0.0  ;;  %v6876_v13 = vadd.f32 %v6822_v11, %v6542_v7  ;;  %v5257_v14 = vpop.f32.mrb[9].mxu0 }
 0x2a5   : > { %5645 = vst [vmem:[%s8396_s25 + $0x20] sm:$0xff] %v5605_v9  ;;  %v5606_v55 = vmax.f32 %v5566_v10, 0.0  ;;  %v6877_v15 = vadd.f32 %v5257_v14, %v8361_v21  ;;  %v6823_v16 = vpop.f32.mrb[10].mxu0 }
 0x2a6   : > { %5648 = vst [vmem:[%s8396_s25 + $0x38] sm:$0xff] %v5608_v12  ;;  %v5524_v17 = vmul.f32 %v6876_v13, %v8383_v32  ;;  %v6878_v18 = vadd.f32 %v6823_v16, %v8363_v22  ;;  %v5260_v19 = vpop.f32.mrb[11].mxu0 }
 0x2a7   : > { %5646 = vst [vmem:[%s8396_s25 + $0x28] sm:$0xff] %v5606_v55  ;;  %v5522_v20 = vmul.f32 %v6877_v15, %v8383_v32  ;;  %v6879_v57 = vadd.f32 %v5260_v19, %v8365_v23 }
 0x2a8   : > { %v5571_v7 = vadd.f32 %v8386_v34, %v5524_v17  ;;  %v5525_v6 = vmul.f32 %v6878_v18, %v8383_v32 }
 0x2a9   : > { %v5569_v21 = vadd.f32 %v8386_v34, %v5522_v20  ;;  %v5523_v33 = vmul.f32 %v6879_v57, %v8383_v32 }
 0x2aa   : > { %v5611_v24 = vmax.f32 %v5571_v7, 0.0  ;;  %v5572_v35 = vadd.f32 %v8386_v34, %v5525_v6 }
 0x2ab   : > { %v5609_v22 = vmax.f32 %v5569_v21, 0.0  ;;  %v5570_v36 = vadd.f32 %v8386_v34, %v5523_v33  ;;  %v6826_v37 = vpop.f32.mrb[12].mxu0 }
 0x2ac   : > { %5651 = vst [vmem:[%s8396_s25 + $0x50] sm:$0xff] %v5611_v24  ;;  %v5612_v38 = vmax.f32 %v5572_v35, 0.0  ;;  %v6880_v23 = vadd.f32 %v6826_v37, %v8367_v25  ;;  %v5273_v39 = vpop.f32.mrb[13].mxu0 }
 0x2ad   : > { %5649 = vst [vmem:[%s8396_s25 + $0x40] sm:$0xff] %v5609_v22  ;;  %v5610_v40 = vmax.f32 %v5570_v36, 0.0  ;;  %v6881_v41 = vadd.f32 %v5273_v39, %v8369_v26  ;;  %v6827_v42 = vpop.f32.mrb[14].mxu0 }
 0x2ae   : > { %5652 = vst [vmem:[%s8396_s25 + $0x58] sm:$0xff] %v5612_v38  ;;  %v5528_v43 = vmul.f32 %v6880_v23, %v8383_v32  ;;  %v6882_v44 = vadd.f32 %v6827_v42, %v8371_v27  ;;  %v5276_v45 = vpop.f32.mrb[15].mxu0 }
 0x2af   : > { %5650 = vst [vmem:[%s8396_s25 + $0x48] sm:$0xff] %v5610_v40  ;;  %v5526_v46 = vmul.f32 %v6881_v41, %v8383_v32  ;;  %v6883_v47 = vadd.f32 %v5276_v45, %v8373_v28 }
 0x2b0   : > { %v5575_v25 = vadd.f32 %v8386_v34, %v5528_v43  ;;  %v5529_v48 = vmul.f32 %v6882_v44, %v8383_v32 }
 0x2b1   : > { %v5573_v26 = vadd.f32 %v8386_v34, %v5526_v46  ;;  %v5527_v49 = vmul.f32 %v6883_v47, %v8383_v32 }
 0x2b2   : > { %v5615_v50 = vmax.f32 %v5575_v25, 0.0  ;;  %v5576_v51 = vadd.f32 %v8386_v34, %v5529_v48 }
 0x2b3   : > { %v5613_v27 = vmax.f32 %v5573_v26, 0.0  ;;  %v5574_v52 = vadd.f32 %v8386_v34, %v5527_v49  ;;  %v6830_v53 = vpop.f32.mrb[16].mxu0 }
 0x2b4   : > { %5655 = vst [vmem:[%s8396_s25 + $0x70] sm:$0xff] %v5615_v50  ;;  %v5616_v54 = vmax.f32 %v5576_v51, 0.0  ;;  %v6884_v28 = vadd.f32 %v6830_v53, %v8375_v29  ;;  %v5289_v56 = vpop.f32.mrb[17].mxu0 }
 0x2b5   : > { %5653 = vst [vmem:[%s8396_s25 + $0x60] sm:$0xff] %v5613_v27  ;;  %v5614_v58 = vmax.f32 %v5574_v52, 0.0  ;;  %v6885_v59 = vadd.f32 %v5289_v56, %v8377_v30  ;;  %v6831_v60 = vpop.f32.mrb[18].mxu0 }
 0x2b6   : > { %5656 = vst [vmem:[%s8396_s25 + $0x78] sm:$0xff] %v5616_v54  ;;  %v5532_v61 = vmul.f32 %v6884_v28, %v8383_v32  ;;  %v6886_v62 = vadd.f32 %v6831_v60, %v8379_v63  ;;  %v5292_v0 = vpop.f32.mrb[19].mxu0 }
 0x2b7   : > { %5654 = vst [vmem:[%s8396_s25 + $0x68] sm:$0xff] %v5614_v58  ;;  %v5530_v1 = vmul.f32 %v6885_v59, %v8383_v32  ;;  %v6887_v2 = vadd.f32 %v5292_v0, %v8381_v31 }
 0x2b8   : > { %v5579_v29 = vadd.f32 %v8386_v34, %v5532_v61  ;;  %v5533_v3 = vmul.f32 %v6886_v62, %v8383_v32 }
 0x2b9   : > { %v5577_v30 = vadd.f32 %v8386_v34, %v5530_v1  ;;  %v5531_v4 = vmul.f32 %v6887_v2, %v8383_v32 }
 0x2ba   : > { %v5619_v5 = vmax.f32 %v5579_v29, 0.0  ;;  %v5580_v8 = vadd.f32 %v8386_v34, %v5533_v3  ;;  %v6610_v63 = vpop.f32.mrb[20].mxu1 }
 0x2bb   : > { %v5617_v9 = vmax.f32 %v5577_v30, 0.0  ;;  %v5578_v10 = vadd.f32 %v8386_v34, %v5531_v4  ;;  %v6834_v11 = vpop.f32.mrb[20].mxu0  ;;  %v3018_v31 = vpop.f32.mrb[21].mxu1 }
 0x2bc   : > { %5659 = vst [vmem:[%s8396_s25 + $0x90] sm:$0xff] %v5619_v5  ;;  %v5620_v12 = vmax.f32 %v5580_v8, 0.0  ;;  %v6888_v13 = vadd.f32 %v6834_v11, %v6610_v63  ;;  %v5305_v14 = vpop.f32.mrb[21].mxu0  ;;  %v6611_v55 = vpop.f32.mrb[22].mxu1 }
 0x2bd   : > { %5657 = vst [vmem:[%s8396_s25 + $0x80] sm:$0xff] %v5617_v9  ;;  %v5618_v15 = vmax.f32 %v5578_v10, 0.0  ;;  %v6889_v16 = vadd.f32 %v5305_v14, %v3018_v31  ;;  %v6835_v17 = vpop.f32.mrb[22].mxu0  ;;  %v3021_v18 = vpop.f32.mrb[23].mxu1 }
 0x2be   : > { %5660 = vst [vmem:[%s8396_s25 + $0x98] sm:$0xff] %v5620_v12  ;;  %v5536_v19 = vmul.f32 %v6888_v13, %v8383_v32  ;;  %v6890_v20 = vadd.f32 %v6835_v17, %v6611_v55  ;;  %v5308_v57 = vpop.f32.mrb[23].mxu0 }
 0x2bf   : > { %5658 = vst [vmem:[%s8396_s25 + $0x88] sm:$0xff] %v5618_v15  ;;  %v5534_v7 = vmul.f32 %v6889_v16, %v8383_v32  ;;  %v6891_v6 = vadd.f32 %v5308_v57, %v3021_v18 }
 0x2c0   : > { %v5583_v21 = vadd.f32 %v8386_v34, %v5536_v19  ;;  %v5537_v33 = vmul.f32 %v6890_v20, %v8383_v32 }
 0x2c1   : > { %v5581_v24 = vadd.f32 %v8386_v34, %v5534_v7  ;;  %v5535_v35 = vmul.f32 %v6891_v6, %v8383_v32 }
 0x2c2   : > { %v5623_v22 = vmax.f32 %v5583_v21, 0.0  ;;  %v5584_v36 = vadd.f32 %v8386_v34, %v5537_v33  ;;  %v6614_v37 = vpop.f32.mrb[24].mxu1 }
 0x2c3   : > { %v5621_v38 = vmax.f32 %v5581_v24, 0.0  ;;  %v5582_v23 = vadd.f32 %v8386_v34, %v5535_v35  ;;  %v6838_v39 = vpop.f32.mrb[24].mxu0  ;;  %v3034_v40 = vpop.f32.mrb[25].mxu1 }
 0x2c4   : > { %5663 = vst [vmem:[%s8396_s25 + $0xb0] sm:$0xff] %v5623_v22  ;;  %v5624_v41 = vmax.f32 %v5584_v36, 0.0  ;;  %v6892_v42 = vadd.f32 %v6838_v39, %v6614_v37  ;;  %v5321_v43 = vpop.f32.mrb[25].mxu0  ;;  %v6615_v44 = vpop.f32.mrb[26].mxu1 }
 0x2c5   : > { %5661 = vst [vmem:[%s8396_s25 + $0xa0] sm:$0xff] %v5621_v38  ;;  %v5622_v45 = vmax.f32 %v5582_v23, 0.0  ;;  %v6893_v46 = vadd.f32 %v5321_v43, %v3034_v40  ;;  %v6839_v47 = vpop.f32.mrb[26].mxu0  ;;  %v3037_v25 = vpop.f32.mrb[27].mxu1 }
 0x2c6   : > { %5664 = vst [vmem:[%s8396_s25 + $0xb8] sm:$0xff] %v5624_v41  ;;  %v5540_v48 = vmul.f32 %v6892_v42, %v8383_v32  ;;  %v6894_v26 = vadd.f32 %v6839_v47, %v6615_v44  ;;  %v5324_v49 = vpop.f32.mrb[27].mxu0 }
 0x2c7   : > { %5662 = vst [vmem:[%s8396_s25 + $0xa8] sm:$0xff] %v5622_v45  ;;  %v5538_v50 = vmul.f32 %v6893_v46, %v8383_v32  ;;  %v6895_v51 = vadd.f32 %v5324_v49, %v3037_v25 }
 0x2c8   : > { %v5587_v27 = vadd.f32 %v8386_v34, %v5540_v48  ;;  %v5541_v52 = vmul.f32 %v6894_v26, %v8383_v32 }
 0x2c9   : > { %v5585_v53 = vadd.f32 %v8386_v34, %v5538_v50  ;;  %v5539_v54 = vmul.f32 %v6895_v51, %v8383_v32 }
 0x2ca   : > { %v5627_v28 = vmax.f32 %v5587_v27, 0.0  ;;  %v5588_v56 = vadd.f32 %v8386_v34, %v5541_v52  ;;  %v6618_v58 = vpop.f32.mrb[28].mxu1 }
 0x2cb   : > { %v5625_v59 = vmax.f32 %v5585_v53, 0.0  ;;  %v5586_v60 = vadd.f32 %v8386_v34, %v5539_v54  ;;  %v6842_v61 = vpop.f32.mrb[28].mxu0  ;;  %v3050_v62 = vpop.f32.mrb[29].mxu1 }
 0x2cc   : > { %5667 = vst [vmem:[%s8396_s25 + $0xd0] sm:$0xff] %v5627_v28  ;;  %v5628_v0 = vmax.f32 %v5588_v56, 0.0  ;;  %v6896_v1 = vadd.f32 %v6842_v61, %v6618_v58  ;;  %v5337_v2 = vpop.f32.mrb[29].mxu0  ;;  %v6619_v29 = vpop.f32.mrb[30].mxu1 }
 0x2cd   : > { %5665 = vst [vmem:[%s8396_s25 + $0xc0] sm:$0xff] %v5625_v59  ;;  %v5626_v3 = vmax.f32 %v5586_v60, 0.0  ;;  %v6897_v30 = vadd.f32 %v5337_v2, %v3050_v62  ;;  %v6843_v4 = vpop.f32.mrb[30].mxu0  ;;  %v3053_v5 = vpop.f32.mrb[31].mxu1 }
 0x2ce   : > { %5668 = vst [vmem:[%s8396_s25 + $0xd8] sm:$0xff] %v5628_v0  ;;  %v5544_v8 = vmul.f32 %v6896_v1, %v8383_v32  ;;  %v6898_v63 = vadd.f32 %v6843_v4, %v6619_v29  ;;  %v5340_v9 = vpop.f32.mrb[31].mxu0 }
 0x2cf   : > { %5666 = vst [vmem:[%s8396_s25 + $0xc8] sm:$0xff] %v5626_v3  ;;  %v5542_v10 = vmul.f32 %v6897_v30, %v8383_v32  ;;  %v6899_v11 = vadd.f32 %v5340_v9, %v3053_v5 }
 0x2d0   : > { %v5591_v31 = vadd.f32 %v8386_v34, %v5544_v8  ;;  %v5545_v12 = vmul.f32 %v6898_v63, %v8383_v32 }
 0x2d1   : > { %v5589_v13 = vadd.f32 %v8386_v34, %v5542_v10  ;;  %v5543_v14 = vmul.f32 %v6899_v11, %v8383_v32 }
 0x2d2   : > { %v5631_v55 = vmax.f32 %v5591_v31, 0.0  ;;  %v5592_v15 = vadd.f32 %v8386_v34, %v5545_v12  ;;  %v6622_v16 = vpop.f32.mrb[32].mxu1 }
 0x2d3   : > { %v5629_v17 = vmax.f32 %v5589_v13, 0.0  ;;  %v5590_v18 = vadd.f32 %v8386_v34, %v5543_v14  ;;  %v6846_v19 = vpop.f32.mrb[32].mxu0  ;;  %v3066_v20 = vpop.f32.mrb[33].mxu1 }
 0x2d4   : > { %5671 = vst [vmem:[%s8396_s25 + $0xf0] sm:$0xff] %v5631_v55  ;;  %v5632_v57 = vmax.f32 %v5592_v15, 0.0  ;;  %v6900_v7 = vadd.f32 %v6846_v19, %v6622_v16  ;;  %v5353_v6 = vpop.f32.mrb[33].mxu0  ;;  %v6623_v21 = vpop.f32.mrb[34].mxu1 }
 0x2d5   : > { %5669 = vst [vmem:[%s8396_s25 + $0xe0] sm:$0xff] %v5629_v17  ;;  %v5630_v33 = vmax.f32 %v5590_v18, 0.0  ;;  %v6901_v24 = vadd.f32 %v5353_v6, %v3066_v20  ;;  %v6847_v35 = vpop.f32.mrb[34].mxu0  ;;  %v3069_v22 = vpop.f32.mrb[35].mxu1 }
 0x2d6   : > { %5672 = vst [vmem:[%s8396_s25 + $0xf8] sm:$0xff] %v5632_v57  ;;  %v5548_v36 = vmul.f32 %v6900_v7, %v8383_v32  ;;  %v6902_v37 = vadd.f32 %v6847_v35, %v6623_v21  ;;  %v5356_v38 = vpop.f32.mrb[35].mxu0 }
 0x2d7   : > { %5670 = vst [vmem:[%s8396_s25 + $0xe8] sm:$0xff] %v5630_v33  ;;  %v5546_v23 = vmul.f32 %v6901_v24, %v8383_v32  ;;  %v6903_v39 = vadd.f32 %v5356_v38, %v3069_v22 }
 0x2d8   : > { %v5595_v40 = vadd.f32 %v8386_v34, %v5548_v36  ;;  %v5549_v41 = vmul.f32 %v6902_v37, %v8383_v32 }
 0x2d9   : > { %v5593_v42 = vadd.f32 %v8386_v34, %v5546_v23  ;;  %v5547_v43 = vmul.f32 %v6903_v39, %v8383_v32 }
 0x2da   : > { %v5635_v44 = vmax.f32 %v5595_v40, 0.0  ;;  %v5596_v45 = vadd.f32 %v8386_v34, %v5549_v41  ;;  %v6626_v46 = vpop.f32.mrb[36].mxu1 }
 0x2db   : > { %v5633_v47 = vmax.f32 %v5593_v42, 0.0  ;;  %v5594_v25 = vadd.f32 %v8386_v34, %v5547_v43  ;;  %v6850_v48 = vpop.f32.mrb[36].mxu0  ;;  %v3082_v26 = vpop.f32.mrb[37].mxu1 }
 0x2dc   : > { %5675 = vst [vmem:[%s8396_s25 + $0x110] sm:$0xff] %v5635_v44  ;;  %v5636_v49 = vmax.f32 %v5596_v45, 0.0  ;;  %v6904_v50 = vadd.f32 %v6850_v48, %v6626_v46  ;;  %v5369_v51 = vpop.f32.mrb[37].mxu0  ;;  %v6627_v27 = vpop.f32.mrb[38].mxu1 }
 0x2dd   : > { %5673 = vst [vmem:[%s8396_s25 + $0x100] sm:$0xff] %v5633_v47  ;;  %v5634_v52 = vmax.f32 %v5594_v25, 0.0  ;;  %v6905_v53 = vadd.f32 %v5369_v51, %v3082_v26  ;;  %v6851_v54 = vpop.f32.mrb[38].mxu0  ;;  %v3085_v28 = vpop.f32.mrb[39].mxu1 }
 0x2de   : > { %5676 = vst [vmem:[%s8396_s25 + $0x118] sm:$0xff] %v5636_v49  ;;  %v5552_v56 = vmul.f32 %v6904_v50, %v8383_v32  ;;  %v6906_v58 = vadd.f32 %v6851_v54, %v6627_v27  ;;  %v5372_v59 = vpop.f32.mrb[39].mxu0 }
 0x2df   : > { %5674 = vst [vmem:[%s8396_s25 + $0x108] sm:$0xff] %v5634_v52  ;;  %v5550_v60 = vmul.f32 %v6905_v53, %v8383_v32  ;;  %v6907_v61 = vadd.f32 %v5372_v59, %v3085_v28 }
 0x2e0   : > { %v5599_v62 = vadd.f32 %v8386_v34, %v5552_v56  ;;  %v5553_v0 = vmul.f32 %v6906_v58, %v8383_v32 }
 0x2e1   : > { %v5597_v1 = vadd.f32 %v8386_v34, %v5550_v60  ;;  %v5551_v2 = vmul.f32 %v6907_v61, %v8383_v32 }
 0x2e2   : > { %v5639_v29 = vmax.f32 %v5599_v62, 0.0  ;;  %v5600_v3 = vadd.f32 %v8386_v34, %v5553_v0 }
 0x2e3   : > { %v5637_v30 = vmax.f32 %v5597_v1, 0.0  ;;  %v5598_v4 = vadd.f32 %v8386_v34, %v5551_v2 }
 0x2e4   : > { %5679 = vst [vmem:[%s8396_s25 + $0x130] sm:$0xff] %v5639_v29  ;;  %v5640_v5 = vmax.f32 %v5600_v3, 0.0 }
 0x2e5   : > { %5677 = vst [vmem:[%s8396_s25 + $0x120] sm:$0xff] %v5637_v30  ;;  %v5638_v32 = vmax.f32 %v5598_v4, 0.0 }
 0x2e6   : > { %5680 = vst [vmem:[%s8396_s25 + $0x138] sm:$0xff] %v5640_v5 }
 0x2e7   : > { %5678 = vst [vmem:[%s8396_s25 + $0x128] sm:$0xff] %v5638_v32 }
 0x2e8   : > { %7683 = shalt.err (!%p7680_p0)
}
 0x2e9   : > { %s7684_s5 = scalar_lea.hbm %s8523_s26, 5120  ;;  %s7688_s28 = scalar_lea.hbm %s8581_s4, 10240 }
 0x2ea   : > { %p7685_p4 = scmp.ne.s32.totalorder %s8523_s26, %s7684_s5  ;;  %p7689_p12 = scmp.lt.u32.totalorder %s8523_s26, %s8581_s4 }
 0x2eb   : > { %p7690_p1 = scmp.lt.u32.totalorder %s7688_s28, %s7684_s5  ;;  %p7692_p13 = scmp.lt.u32.totalorder %s7684_s5, %s8523_s26 }
 0x2ec   : > { %p7686_p2 = pnand %p7685_p4, %p7951_p10 }
 0x2ed   : > { %p7691_p11 = por %p7690_p1, %p7689_p12 }
 0x2ee   : > { %p7687_p8 = pneg %p7686_p2 }
 0x2ef   : > { %p7693_p6 = por %p7692_p13, %p7691_p11 }
 0x2f1   : > { %p7694_p3 = pnand %p7693_p6, %p7687_p8 }
 0x2f3   : > { %7697 = shalt.err (!%p7694_p3)
}
 0x2f4   : > { %s7769_s25 = smov 128   ;;  %s7770_s27 = smov 8  }
 0x2f5   : > { %7207 = dma.vmem_to_hbm [thread:$0]  (%p7951_p10), %s8525_s7, 5120, %s8523_s26, %s5682_s18, %s7769_s25, %s7769_s25, %s7770_s27  }
 0x2f6 PF: > { %s8603_s22 = sld [smem:[#allocation16_spill]]  ;;  %s5711_s9 = sand.u32 1, %s7740_s15  }
 0x2f7   : > { %p8605_p7 = scmp.ge.s32.totalorder %s7760_s20, 2  ;;  %s5712_s10 = scalar_lea.sflag [#allocation5], %s5711_s9 }
 0x2fc   : > { %p8604_p5 = scmp.ne.s32.totalorder %s8603_s22, 0 }
 0x2fe   : > { %p7224_p9 = pnand %p8605_p7, %p8604_p5 }
 0x300   : > { %7735 = dma.done.wait (!%p7224_p9), %s5712_s10, 5120  }
 0x301   : > { %7737 = vsyncadd (!%p7224_p9), %s5712_s10, 4294962176  ;;  %s22_s20 = sadd.s32 1, %s7760_s20   ;;  %s8606_s15 = smov %s7744_s16 }
 0x302   : > { %p19_p0 = scmp.ge.s32.totalorder %s22_s20, 4   ;;  %s8607_s16 = smov %s7748_s17 }
 0x303   : > { %s8608_s17 = smov %s7967_s24  ;;  %s8609_s18 = smov %s7756_s19 }
 0x304   : > { %s8610_s19 = smov %s8612_s11  ;;  %21 = sbr.rel (!%p19_p0) target bundleno = 8 (0x8), region = 112 }
 0x30b   :  { %5717 = vsyncpa [#allocation4], 1 }
 0x30c   :  { %5719 = vsyncpa [#allocation4 + $0x1], 1 }
 0x30d   :  { %5720 = vsyncpa [#allocation7], 1 }
 0x30e   :  { %5721 = vsyncpa [#allocation10], 1 }
 0x30f   :  { %5722 = vsyncpa [#allocation5], 1 }
 0x310   :  { %5724 = vsyncpa [#allocation5 + $0x1], 1 }

</bundles_post_ra>
